<compile_context>
chip_gen: v5e
topology: v5e:2x2
jax: 0.10.0
libtpu: 0.0.40
codegen_flags: <defaults>
</compile_context>

<pallas_src>
import functools

import jax
import jax.numpy as jnp
from jax.experimental import pallas as pl
from jax.experimental.pallas import tpu as pltpu


# ---------------------------------------------------------------------------
# Pallas kernels
# ---------------------------------------------------------------------------
def _conv_tanh_pool_kernel(p_ref, w_ref, b_ref, o_ref, *, wo):
    """Fused conv-as-matmul + bias + tanh + MaxPool2d(2, stride=1).

    p_ref: (1, K, M) patches^T for B_TILE images, M = B_TILE*Ho*Wo (lane-dense).
    w_ref: (Cout, K)   flattened conv weights (PyTorch (cin, kh, kw) order).
    b_ref: (Cout, 1)   bias (broadcast over lanes).
    o_ref: (1, Cout, M) pooled-but-uncompacted output (garbage in the last
                        row/col of each image, dropped by the caller).
    """
    p = p_ref[0]                                                  # (K, M)
    acc = jnp.dot(w_ref[...], p, preferred_element_type=jnp.float32)
    acc = jnp.tanh(acc + b_ref[...])                              # (Cout, M)

    # Separable MaxPool2d(k=2, s=1) on the lane axis (flattened (b, i, j)) via
    # circular lane shifts:
    #   row[m]    = max(acc[m], acc[m+1])        (horizontal pair max)
    #   pooled[m] = max(row[m], row[m+wo])       (vertical pair max)
    # Wrapped values only contaminate positions with i == Ho-1 or j == Wo-1,
    # which the caller discards.
    def shift(v, s):                                              # v[:, (m+s) % M]
        return jnp.concatenate([v[:, s:], v[:, :s]], axis=1)

    row = jnp.maximum(acc, shift(acc, 1))
    pooled = jnp.maximum(row, shift(row, wo))
    o_ref[0] = pooled.astype(o_ref.dtype)


def _classifier_kernel(x_ref, w1_ref, b1_ref, w2_ref, b2_ref, o_ref):
    """Fused Linear(512,32) -> Tanh -> Linear(32,10), computed transposed."""
    h = jnp.tanh(
        jnp.dot(w1_ref[...], x_ref[...], preferred_element_type=jnp.float32)
        + b1_ref[...])
    o_ref[...] = (
        jnp.dot(w2_ref[...], h, preferred_element_type=jnp.float32)
        + b2_ref[...]).astype(o_ref.dtype)


# ---------------------------------------------------------------------------
# Glue: transposed im2col (kept channel-first, no NCHW<->NHWC transposes)
# ---------------------------------------------------------------------------
# TODO(synk): generate im2col patches inside the Pallas kernel (strided pl.ds
# reads of the padded image held in VMEM) instead of materializing them in HBM.
def im2col_T(x_cnhw, k, stride, pad):
    """x: (C, N, H, W) -> patches^T (C*k*k, N, Ho*Wo) with PyTorch (c,kh,kw) order."""
    C, N, H, W = x_cnhw.shape
    if pad > 0:
        x_cnhw = jnp.pad(x_cnhw, ((0, 0), (0, 0), (pad, pad), (pad, pad)))
    Hp, Wp = H + 2 * pad, W + 2 * pad
    Ho = (Hp - k) // stride + 1
    Wo = (Wp - k) // stride + 1
    slices = []
    for kh in range(k):
        for kw in range(k):
            slices.append(
                x_cnhw[:, :, kh:kh + stride * (Ho - 1) + 1:stride,
                       kw:kw + stride * (Wo - 1) + 1:stride])
    p = jnp.stack(slices, axis=1)                  # (C, k*k, N, Ho, Wo)
    return p.reshape(C * k * k, N, Ho * Wo), Ho, Wo


def conv_tanh_pool(x_cnhw, w, b, *, k, stride, pad, b_tile=8):
    """Conv2d + bias + Tanh + MaxPool2d(2, stride=1), fused in one pallas_call.

    x_cnhw: (Cin, N, H, W) with N a multiple of b_tile.
    w: (Cout, Cin, k, k) PyTorch layout.  Returns (Cout, N, Ho-1, Wo-1).
    """
    Cin, N, H, W = x_cnhw.shape
    Cout = w.shape[0]
    assert N % b_tile == 0

    pT, Ho, Wo = im2col_T(x_cnhw, k, stride, pad)   # (K, N, Ho*Wo)
    K = Cin * k * k
    G = N // b_tile
    M = b_tile * Ho * Wo

    # Group batch into tiles: (K, N, S) -> (G, K, b_tile*S)  (lane-dense M axis)
    p = pT.reshape(K, G, b_tile, Ho * Wo).transpose(1, 0, 2, 3).reshape(G, K, M)
    w2 = w.reshape(Cout, K)

    # Keep the sublane (second-to-last) dim a multiple of 8; do NOT pad to 128:
    # the kernel is HBM-bound and extra K padding only inflates patch traffic.
    K_pad = ((K + 7) // 8) * 8
    if K_pad != K:
        p = jnp.pad(p, ((0, 0), (0, K_pad - K), (0, 0)))
        w2 = jnp.pad(w2, ((0, 0), (0, K_pad - K)))

    kernel = functools.partial(_conv_tanh_pool_kernel, wo=Wo)
    out = pl.pallas_call(
        kernel,
        out_shape=jax.ShapeDtypeStruct((G, Cout, M), jnp.float32),
        grid=(G,),
        in_specs=[
            pl.BlockSpec((1, K_pad, M), lambda g: (g, 0, 0)),
            pl.BlockSpec((Cout, K_pad), lambda g: (0, 0)),
            pl.BlockSpec((Cout, 1), lambda g: (0, 0)),
        ],
        out_specs=pl.BlockSpec((1, Cout, M), lambda g: (g, 0, 0)),
        compiler_params=pltpu.CompilerParams(
            dimension_semantics=("parallel",)),
    )(p.astype(jnp.float32), w2.astype(jnp.float32),
      b.reshape(Cout, 1).astype(jnp.float32))

    # (G, Cout, b_tile*Ho*Wo) -> (Cout, N, Ho, Wo); drop the garbage last
    # row/col of each image produced by the circular-shift pooling.
    out = (out.reshape(G, Cout, b_tile, Ho, Wo)
              .transpose(1, 0, 2, 3, 4)
              .reshape(Cout, N, Ho, Wo))
    return out[:, :, :Ho - 1, :Wo - 1]


def classifier_fused(xT, w1, b1, w2, b2):
    """out^T = W2 @ tanh(W1 @ x^T + b1) + b2 ; xT: (F, N) -> (10, N)."""
    F, N = xT.shape
    Hd = w1.shape[0]
    O = w2.shape[0]
    return pl.pallas_call(
        _classifier_kernel,
        out_shape=jax.ShapeDtypeStruct((O, N), jnp.float32),
        grid=(1,),
        in_specs=[
            pl.BlockSpec((F, N), lambda i: (0, 0)),
            pl.BlockSpec((Hd, F), lambda i: (0, 0)),
            pl.BlockSpec((Hd, 1), lambda i: (0, 0)),
            pl.BlockSpec((O, Hd), lambda i: (0, 0)),
            pl.BlockSpec((O, 1), lambda i: (0, 0)),
        ],
        out_specs=pl.BlockSpec((O, N), lambda i: (0, 0)),
    )(xT.astype(jnp.float32), w1.astype(jnp.float32),
      b1.reshape(Hd, 1).astype(jnp.float32), w2.astype(jnp.float32),
      b2.reshape(O, 1).astype(jnp.float32))


# ---------------------------------------------------------------------------
# Model
# ---------------------------------------------------------------------------
def init_params(key):
    """Deterministic parameter init (shapes from MNIST_CNN.__init__, in_ch=1)."""
    ks = jax.random.split(key, 8)

    def scaled(k, shape, fan_in):
        return jax.random.normal(k, shape, jnp.float32) / jnp.sqrt(float(fan_in))

    return {
        # Conv2d(1, 16, k=8, s=2, p=2)
        "w_conv1": scaled(ks[0], (16, 1, 8, 8), 1 * 8 * 8),
        "b_conv1": scaled(ks[1], (16,), 1 * 8 * 8),
        # Conv2d(16, 32, k=4, s=2, p=0)
        "w_conv2": scaled(ks[2], (32, 16, 4, 4), 16 * 4 * 4),
        "b_conv2": scaled(ks[3], (32,), 16 * 4 * 4),
        # Linear(512, 32) / Linear(32, 10), PyTorch (out, in) layout
        "w_fc1": scaled(ks[4], (32, 512), 512),
        "b_fc1": scaled(ks[5], (32,), 512),
        "w_fc2": scaled(ks[6], (10, 32), 32),
        "b_fc2": scaled(ks[7], (10,), 32),
    }


def mnist_cnn_forward(params, x_nchw, b_tile=8):
    # in_channels == 1 -> norm is Identity, no 7x7 reshape branch.
    N = x_nchw.shape[0]
    N_pad = ((N + b_tile - 1) // b_tile) * b_tile
    if N_pad != N:
        x_nchw = jnp.pad(x_nchw, ((0, N_pad - N), (0, 0), (0, 0), (0, 0)))

    # Internal layout: channel-first (C, N, H, W) for the lane-dense matmuls.
    x = x_nchw.transpose(1, 0, 2, 3).astype(jnp.float32)

    x = conv_tanh_pool(x, params["w_conv1"], params["b_conv1"],
                       k=8, stride=2, pad=2, b_tile=b_tile)   # (16, N_pad, 12, 12)
    x = conv_tanh_pool(x, params["w_conv2"], params["b_conv2"],
                       k=4, stride=2, pad=0, b_tile=b_tile)   # (32, N_pad, 4, 4)

    # PyTorch flatten order (c, h, w); keep batch on the lane axis.
    C2, _, Hf, Wf = x.shape
    xT = x.transpose(0, 2, 3, 1).reshape(C2 * Hf * Wf, N_pad)  # (512, N_pad)
    outT = classifier_fused(xT, params["w_fc1"], params["b_fc1"],
                            params["w_fc2"], params["b_fc2"])   # (10, N_pad)
    return outT.T[:N]


# ---------------------------------------------------------------------------
# Pure-JAX reference (for sanity check)
# ---------------------------------------------------------------------------
def reference_forward(params, x_nchw):
    def conv(x, w, b, stride, pad):
        y = jax.lax.conv_general_dilated(
            x, w, window_strides=(stride, stride),
            padding=[(pad, pad), (pad, pad)],
            dimension_numbers=("NCHW", "OIHW", "NCHW"))
        return jnp.tanh(y + b.reshape(1, -1, 1, 1))

    def maxpool(x):
        return jnp.maximum(
            jnp.maximum(x[:, :, :-1, :-1], x[:, :, :-1, 1:]),
            jnp.maximum(x[:, :, 1:, :-1], x[:, :, 1:, 1:]))

    x = conv(x_nchw, params["w_conv1"], params["b_conv1"], 2, 2)
    x = maxpool(x)
    x = conv(x, params["w_conv2"], params["b_conv2"], 2, 0)
    x = maxpool(x)
    x = x.reshape(x.shape[0], -1)
    x = jnp.tanh(x @ params["w_fc1"].T + params["b_fc1"])
    return x @ params["w_fc2"].T + params["b_fc2"]


if __name__ == "__main__":
    key = jax.random.PRNGKey(0)
    k_param, k_x = jax.random.split(key)

    # 28x28 is required so the feature map flattens to 32*4*4 = 512.
    batch = 2
    x = jax.random.normal(k_x, (batch, 1, 28, 28), jnp.float32)
    params = init_params(k_param)

    out = jax.jit(mnist_cnn_forward)(params, x)
    out = jax.block_until_ready(out)
    assert out.shape == (batch, 10), out.shape

    ref = reference_forward(params, x)
    assert jnp.allclose(out, ref, atol=1e-2, rtol=1e-2), (
        f"max abs diff {jnp.max(jnp.abs(out - ref))}")

    print("KERNEL_OK")
</pallas_src>

<mosaic_0001>
module attributes {stable_mosaic.version = 11 : i64} {
  func.func @_conv_tanh_pool_kernel(%arg0: i32, %arg1: memref<1x64x1352xf32, #tpu.memory_space<vmem>>, %arg2: memref<16x64xf32, #tpu.memory_space<vmem>>, %arg3: memref<16x1xf32, #tpu.memory_space<vmem>>, %arg4: memref<1x16x1352xf32, #tpu.memory_space<vmem>>) attributes {dimension_semantics = [#tpu.dimension_semantics<parallel>], iteration_bounds = array<i64: 1>, scalar_prefetch = 0 : i64, scratch_operands = 0 : i64, tpu.core_type = #tpu.core_type<tc>, window_params = [{transform_indices = @transform_0, window_bounds = array<i64: 1, 64, 1352>}, {pipeline_mode = #tpu.pipeline_mode<synchronous>, transform_indices = @transform_1, window_bounds = array<i64: 16, 64>}, {pipeline_mode = #tpu.pipeline_mode<synchronous>, transform_indices = @transform_2, window_bounds = array<i64: 16, 1>}, {transform_indices = @transform_3, window_bounds = array<i64: 1, 16, 1352>}]} {
    %c0 = arith.constant 0 : index
    %c0_0 = arith.constant 0 : index
    %c0_1 = arith.constant 0 : index
    %0 = vector.load %arg1[%c0, %c0_0, %c0_1] : memref<1x64x1352xf32, #tpu.memory_space<vmem>>, vector<1x64x1352xf32>
    %1 = vector.shape_cast %0 : vector<1x64x1352xf32> to vector<64x1352xf32>
    %c0_2 = arith.constant 0 : index
    %c0_3 = arith.constant 0 : index
    %2 = vector.load %arg2[%c0_2, %c0_3] : memref<16x64xf32, #tpu.memory_space<vmem>>, vector<16x64xf32>
    %cst = arith.constant dense<0.000000e+00> : vector<16x1352xf32>
    %3 = tpu.matmul %2, %1, %cst {dimension_numbers = #tpu.dot_dimension_numbers<[1], [0], [0], [1], [0, 0, 1, 1], [], []>} : vector<16x64xf32>, vector<64x1352xf32>, vector<16x1352xf32> -> vector<16x1352xf32>
    %c0_4 = arith.constant 0 : index
    %c0_5 = arith.constant 0 : index
    %4 = vector.load %arg3[%c0_4, %c0_5] : memref<16x1xf32, #tpu.memory_space<vmem>>, vector<16x1xf32>
    %5 = vector.broadcast %4 : vector<16x1xf32> to vector<16x1352xf32>
    %6 = arith.addf %3, %5 : vector<16x1352xf32>
    %7 = math.tanh %6 : vector<16x1352xf32>
    %8 = vector.extract_strided_slice %7 {offsets = [0, 1], sizes = [16, 1351], strides = [1, 1]} : vector<16x1352xf32> to vector<16x1351xf32>
    %9 = vector.extract_strided_slice %7 {offsets = [0, 0], sizes = [16, 1], strides = [1, 1]} : vector<16x1352xf32> to vector<16x1xf32>
    %10 = tpu.concatenate %8, %9 in 1 : vector<16x1351xf32>, vector<16x1xf32> -> vector<16x1352xf32>
    %11 = arith.maximumf %7, %10 : vector<16x1352xf32>
    %12 = vector.extract_strided_slice %11 {offsets = [0, 13], sizes = [16, 1339], strides = [1, 1]} : vector<16x1352xf32> to vector<16x1339xf32>
    %13 = vector.extract_strided_slice %11 {offsets = [0, 0], sizes = [16, 13], strides = [1, 1]} : vector<16x1352xf32> to vector<16x13xf32>
    %14 = tpu.concatenate %12, %13 in 1 : vector<16x1339xf32>, vector<16x13xf32> -> vector<16x1352xf32>
    %15 = arith.maximumf %11, %14 : vector<16x1352xf32>
    %c0_6 = arith.constant 0 : index
    %c0_7 = arith.constant 0 : index
    %c0_8 = arith.constant 0 : index
    %16 = vector.load %arg4[%c0_6, %c0_7, %c0_8] : memref<1x16x1352xf32, #tpu.memory_space<vmem>>, vector<1x16x1352xf32>
    %17 = vector.shape_cast %16 : vector<1x16x1352xf32> to vector<16x1352xf32>
    %18 = vector.shape_cast %15 : vector<16x1352xf32> to vector<1x16x1352xf32>
    tpu.vector_store %arg4[%c0_6, %c0_7, %c0_8], %18 {strides = array<i32>} : memref<1x16x1352xf32, #tpu.memory_space<vmem>>, vector<1x16x1352xf32>,
    return
  }
  func.func @transform_0(%arg0: i32) -> (i32, i32, i32) {
    %c0_i32 = arith.constant 0 : i32
    %c0_i32_0 = arith.constant 0 : i32
    %c0_i32_1 = arith.constant 0 : i32
    return %arg0, %c0_i32, %c0_i32_0 : i32, i32, i32
  }
  func.func @transform_1(%arg0: i32) -> (i32, i32) {
    %c0_i32 = arith.constant 0 : i32
    %c0_i32_0 = arith.constant 0 : i32
    %c0_i32_1 = arith.constant 0 : i32
    return %c0_i32, %c0_i32_0 : i32, i32
  }
  func.func @transform_2(%arg0: i32) -> (i32, i32) {
    %c0_i32 = arith.constant 0 : i32
    %c0_i32_0 = arith.constant 0 : i32
    %c0_i32_1 = arith.constant 0 : i32
    return %c0_i32, %c0_i32_0 : i32, i32
  }
  func.func @transform_3(%arg0: i32) -> (i32, i32, i32) {
    %c0_i32 = arith.constant 0 : i32
    %c0_i32_0 = arith.constant 0 : i32
    %c0_i32_1 = arith.constant 0 : i32
    return %arg0, %c0_i32, %c0_i32_0 : i32, i32, i32
  }
}

module attributes {stable_mosaic.version = 11 : i64} {
  func.func @_conv_tanh_pool_kernel(%arg0: i32, %arg1: memref<1x256x200xf32, #tpu.memory_space<vmem>>, %arg2: memref<32x256xf32, #tpu.memory_space<vmem>>, %arg3: memref<32x1xf32, #tpu.memory_space<vmem>>, %arg4: memref<1x32x200xf32, #tpu.memory_space<vmem>>) attributes {dimension_semantics = [#tpu.dimension_semantics<parallel>], iteration_bounds = array<i64: 1>, scalar_prefetch = 0 : i64, scratch_operands = 0 : i64, tpu.core_type = #tpu.core_type<tc>, window_params = [{transform_indices = @transform_0, window_bounds = array<i64: 1, 256, 200>}, {pipeline_mode = #tpu.pipeline_mode<synchronous>, transform_indices = @transform_1, window_bounds = array<i64: 32, 256>}, {pipeline_mode = #tpu.pipeline_mode<synchronous>, transform_indices = @transform_2, window_bounds = array<i64: 32, 1>}, {transform_indices = @transform_3, window_bounds = array<i64: 1, 32, 200>}]} {
    %c0 = arith.constant 0 : index
    %c0_0 = arith.constant 0 : index
    %c0_1 = arith.constant 0 : index
    %0 = vector.load %arg1[%c0, %c0_0, %c0_1] : memref<1x256x200xf32, #tpu.memory_space<vmem>>, vector<1x256x200xf32>
    %1 = vector.shape_cast %0 : vector<1x256x200xf32> to vector<256x200xf32>
    %c0_2 = arith.constant 0 : index
    %c0_3 = arith.constant 0 : index
    %2 = vector.load %arg2[%c0_2, %c0_3] : memref<32x256xf32, #tpu.memory_space<vmem>>, vector<32x256xf32>
    %cst = arith.constant dense<0.000000e+00> : vector<32x200xf32>
    %3 = tpu.matmul %2, %1, %cst {dimension_numbers = #tpu.dot_dimension_numbers<[1], [0], [0], [1], [0, 0, 1, 1], [], []>} : vector<32x256xf32>, vector<256x200xf32>, vector<32x200xf32> -> vector<32x200xf32>
    %c0_4 = arith.constant 0 : index
    %c0_5 = arith.constant 0 : index
    %4 = vector.load %arg3[%c0_4, %c0_5] : memref<32x1xf32, #tpu.memory_space<vmem>>, vector<32x1xf32>
    %5 = vector.broadcast %4 : vector<32x1xf32> to vector<32x200xf32>
    %6 = arith.addf %3, %5 : vector<32x200xf32>
    %7 = math.tanh %6 : vector<32x200xf32>
    %8 = vector.extract_strided_slice %7 {offsets = [0, 1], sizes = [32, 199], strides = [1, 1]} : vector<32x200xf32> to vector<32x199xf32>
    %9 = vector.extract_strided_slice %7 {offsets = [0, 0], sizes = [32, 1], strides = [1, 1]} : vector<32x200xf32> to vector<32x1xf32>
    %10 = tpu.concatenate %8, %9 in 1 : vector<32x199xf32>, vector<32x1xf32> -> vector<32x200xf32>
    %11 = arith.maximumf %7, %10 : vector<32x200xf32>
    %12 = vector.extract_strided_slice %11 {offsets = [0, 5], sizes = [32, 195], strides = [1, 1]} : vector<32x200xf32> to vector<32x195xf32>
    %13 = vector.extract_strided_slice %11 {offsets = [0, 0], sizes = [32, 5], strides = [1, 1]} : vector<32x200xf32> to vector<32x5xf32>
    %14 = tpu.concatenate %12, %13 in 1 : vector<32x195xf32>, vector<32x5xf32> -> vector<32x200xf32>
    %15 = arith.maximumf %11, %14 : vector<32x200xf32>
    %c0_6 = arith.constant 0 : index
    %c0_7 = arith.constant 0 : index
    %c0_8 = arith.constant 0 : index
    %16 = vector.load %arg4[%c0_6, %c0_7, %c0_8] : memref<1x32x200xf32, #tpu.memory_space<vmem>>, vector<1x32x200xf32>
    %17 = vector.shape_cast %16 : vector<1x32x200xf32> to vector<32x200xf32>
    %18 = vector.shape_cast %15 : vector<32x200xf32> to vector<1x32x200xf32>
    tpu.vector_store %arg4[%c0_6, %c0_7, %c0_8], %18 {strides = array<i32>} : memref<1x32x200xf32, #tpu.memory_space<vmem>>, vector<1x32x200xf32>,
    return
  }
  func.func @transform_0(%arg0: i32) -> (i32, i32, i32) {
    %c0_i32 = arith.constant 0 : i32
    %c0_i32_0 = arith.constant 0 : i32
    %c0_i32_1 = arith.constant 0 : i32
    return %arg0, %c0_i32, %c0_i32_0 : i32, i32, i32
  }
  func.func @transform_1(%arg0: i32) -> (i32, i32) {
    %c0_i32 = arith.constant 0 : i32
    %c0_i32_0 = arith.constant 0 : i32
    %c0_i32_1 = arith.constant 0 : i32
    return %c0_i32, %c0_i32_0 : i32, i32
  }
  func.func @transform_2(%arg0: i32) -> (i32, i32) {
    %c0_i32 = arith.constant 0 : i32
    %c0_i32_0 = arith.constant 0 : i32
    %c0_i32_1 = arith.constant 0 : i32
    return %c0_i32, %c0_i32_0 : i32, i32
  }
  func.func @transform_3(%arg0: i32) -> (i32, i32, i32) {
    %c0_i32 = arith.constant 0 : i32
    %c0_i32_0 = arith.constant 0 : i32
    %c0_i32_1 = arith.constant 0 : i32
    return %arg0, %c0_i32, %c0_i32_0 : i32, i32, i32
  }
}

module attributes {stable_mosaic.version = 11 : i64} {
  func.func @_classifier_kernel(%arg0: i32, %arg1: memref<512x8xf32, #tpu.memory_space<vmem>>, %arg2: memref<32x512xf32, #tpu.memory_space<vmem>>, %arg3: memref<32x1xf32, #tpu.memory_space<vmem>>, %arg4: memref<10x32xf32, #tpu.memory_space<vmem>>, %arg5: memref<10x1xf32, #tpu.memory_space<vmem>>, %arg6: memref<10x8xf32, #tpu.memory_space<vmem>>) attributes {dimension_semantics = [#tpu.dimension_semantics<arbitrary>], iteration_bounds = array<i64: 1>, scalar_prefetch = 0 : i64, scratch_operands = 0 : i64, tpu.core_type = #tpu.core_type<tc>, window_params = [{pipeline_mode = #tpu.pipeline_mode<synchronous>, transform_indices = @transform_0, window_bounds = array<i64: 512, 8>}, {pipeline_mode = #tpu.pipeline_mode<synchronous>, transform_indices = @transform_1, window_bounds = array<i64: 32, 512>}, {pipeline_mode = #tpu.pipeline_mode<synchronous>, transform_indices = @transform_2, window_bounds = array<i64: 32, 1>}, {pipeline_mode = #tpu.pipeline_mode<synchronous>, transform_indices = @transform_3, window_bounds = array<i64: 10, 32>}, {pipeline_mode = #tpu.pipeline_mode<synchronous>, transform_indices = @transform_4, window_bounds = array<i64: 10, 1>}, {pipeline_mode = #tpu.pipeline_mode<synchronous>, transform_indices = @transform_5, window_bounds = array<i64: 10, 8>}]} {
    %c0 = arith.constant 0 : index
    %c0_0 = arith.constant 0 : index
    %0 = vector.load %arg2[%c0, %c0_0] : memref<32x512xf32, #tpu.memory_space<vmem>>, vector<32x512xf32>
    %c0_1 = arith.constant 0 : index
    %c0_2 = arith.constant 0 : index
    %1 = vector.load %arg1[%c0_1, %c0_2] : memref<512x8xf32, #tpu.memory_space<vmem>>, vector<512x8xf32>
    %cst = arith.constant dense<0.000000e+00> : vector<32x8xf32>
    %2 = tpu.matmul %0, %1, %cst {dimension_numbers = #tpu.dot_dimension_numbers<[1], [0], [0], [1], [0, 0, 1, 1], [], []>} : vector<32x512xf32>, vector<512x8xf32>, vector<32x8xf32> -> vector<32x8xf32>
    %c0_3 = arith.constant 0 : index
    %c0_4 = arith.constant 0 : index
    %3 = vector.load %arg3[%c0_3, %c0_4] : memref<32x1xf32, #tpu.memory_space<vmem>>, vector<32x1xf32>
    %4 = vector.broadcast %3 : vector<32x1xf32> to vector<32x8xf32>
    %5 = arith.addf %2, %4 : vector<32x8xf32>
    %6 = math.tanh %5 : vector<32x8xf32>
    %c0_5 = arith.constant 0 : index
    %c0_6 = arith.constant 0 : index
    %7 = vector.load %arg4[%c0_5, %c0_6] : memref<10x32xf32, #tpu.memory_space<vmem>>, vector<10x32xf32>
    %cst_7 = arith.constant dense<0.000000e+00> : vector<10x8xf32>
    %8 = tpu.matmul %7, %6, %cst_7 {dimension_numbers = #tpu.dot_dimension_numbers<[1], [0], [0], [1], [0, 0, 1, 1], [], []>} : vector<10x32xf32>, vector<32x8xf32>, vector<10x8xf32> -> vector<10x8xf32>
    %c0_8 = arith.constant 0 : index
    %c0_9 = arith.constant 0 : index
    %9 = vector.load %arg5[%c0_8, %c0_9] : memref<10x1xf32, #tpu.memory_space<vmem>>, vector<10x1xf32>
    %10 = vector.broadcast %9 : vector<10x1xf32> to vector<10x8xf32>
    %11 = arith.addf %8, %10 : vector<10x8xf32>
    %c0_10 = arith.constant 0 : index
    %c0_11 = arith.constant 0 : index
    %12 = vector.load %arg6[%c0_10, %c0_11] : memref<10x8xf32, #tpu.memory_space<vmem>>, vector<10x8xf32>
    tpu.vector_store %arg6[%c0_10, %c0_11], %11 {strides = array<i32>} : memref<10x8xf32, #tpu.memory_space<vmem>>, vector<10x8xf32>,
    return
  }
  func.func @transform_0(%arg0: i32) -> (i32, i32) {
    %c0_i32 = arith.constant 0 : i32
    %c0_i32_0 = arith.constant 0 : i32
    %c0_i32_1 = arith.constant 0 : i32
    return %c0_i32, %c0_i32_0 : i32, i32
  }
  func.func @transform_1(%arg0: i32) -> (i32, i32) {
    %c0_i32 = arith.constant 0 : i32
    %c0_i32_0 = arith.constant 0 : i32
    %c0_i32_1 = arith.constant 0 : i32
    return %c0_i32, %c0_i32_0 : i32, i32
  }
  func.func @transform_2(%arg0: i32) -> (i32, i32) {
    %c0_i32 = arith.constant 0 : i32
    %c0_i32_0 = arith.constant 0 : i32
    %c0_i32_1 = arith.constant 0 : i32
    return %c0_i32, %c0_i32_0 : i32, i32
  }
  func.func @transform_3(%arg0: i32) -> (i32, i32) {
    %c0_i32 = arith.constant 0 : i32
    %c0_i32_0 = arith.constant 0 : i32
    %c0_i32_1 = arith.constant 0 : i32
    return %c0_i32, %c0_i32_0 : i32, i32
  }
  func.func @transform_4(%arg0: i32) -> (i32, i32) {
    %c0_i32 = arith.constant 0 : i32
    %c0_i32_0 = arith.constant 0 : i32
    %c0_i32_1 = arith.constant 0 : i32
    return %c0_i32, %c0_i32_0 : i32, i32
  }
  func.func @transform_5(%arg0: i32) -> (i32, i32) {
    %c0_i32 = arith.constant 0 : i32
    %c0_i32_0 = arith.constant 0 : i32
    %c0_i32_1 = arith.constant 0 : i32
    return %c0_i32, %c0_i32_0 : i32, i32
  }
}

</mosaic_0001>

<bundles_post_ra>
// kernel: mnist_cnn_forward.3
= control target key start
LH: loop header
LB: loop body
LE: loop exit
PB: predicated region body
PF: predicated region fallthrough
CT: control target
= control target key end

     0   :  { %v785_v3 = vmov 0   ;;  %vm116_vm0 = vcmask 523264   ;;  %s787_s28 = smov 127   ;;  %vm464_vm1 = vcmask 1039360   ;;  %s788_s29 = smov 115   ;;  %vm513_vm2 = vcmask 580608   ;;  %s1495_s0 = inlined_call_operand.vmem [shape: f32[1,64,1352], index: 0, kind: input, shape index: {}]   ;;  %s1496_s1 = inlined_call_operand.vmem [shape: f32[16,64], index: 1, kind: input, shape index: {}]   ;;  %s1497_s2 = inlined_call_operand.vmem [shape: f32[16,1], index: 2, kind: input, shape index: {}]   ;;  %s1498_s3 = inlined_call_operand.vmem [shape: f32[1,16,1352], index: 3, kind: output, shape index: {}]  }
   0x1   :  { %v91_v0 = vld [vmem:[%s1495_s0 + $0x268] sm:$0xff]  ;;  %v92_v1 = vld [vmem:[%s1495_s0 + $0x270] sm:$0xff]  ;;  %v93_v2 = vld [vmem:[%s1495_s0 + $0x278] sm:$0xff]  ;;  %740 = vset.pattern.permute.xlu0 %v785_v3  ;;  %s789_s30 = smov 59   ;;  %vm604_vm3 = vcmask 941056   ;;  %vm653_vm4 = vcmask 482304  }
   0x2   :  { %131 = vmatpush.msra.mxu0 %v91_v0  ;;  %154 = vmatpush.msra.mxu1 %v92_v1  ;;  %v94_v4 = vld [vmem:[%s1495_s0 + $0x280] sm:$0xff]  ;;  %v80_v5 = vld [vmem:[%s1495_s0 + $0x210] sm:$0xff]  ;;  %v81_v6 = vld [vmem:[%s1495_s0 + $0x218] sm:$0xff]  ;;  %vm688_vm5 = vcmask 588800  }
   0x3   :  { %177 = vmatpush.msra.mxu2 %v93_v2  ;;  %200 = vmatpush.msra.mxu3 %v94_v4  ;;  %v82_v7 = vld [vmem:[%s1495_s0 + $0x220] sm:$0xff]  ;;  %v83_v8 = vld [vmem:[%s1495_s0 + $0x228] sm:$0xff]  ;;  %v69_v9 = vld [vmem:[%s1495_s0 + $0x1b8] sm:$0xff] }
   0x4   :  { %132 = vmatpush.msra.mxu0 %v80_v5  ;;  %155 = vmatpush.msra.mxu1 %v81_v6  ;;  %v70_v10 = vld [vmem:[%s1495_s0 + $0x1c0] sm:$0xff]  ;;  %v71_v11 = vld [vmem:[%s1495_s0 + $0x1c8] sm:$0xff]  ;;  %v72_v12 = vld [vmem:[%s1495_s0 + $0x1d0] sm:$0xff] }
   0x5   :  { %178 = vmatpush.msra.mxu2 %v82_v7  ;;  %201 = vmatpush.msra.mxu3 %v83_v8  ;;  %v58_v13 = vld [vmem:[%s1495_s0 + $0x160] sm:$0xff]  ;;  %v59_v14 = vld [vmem:[%s1495_s0 + $0x168] sm:$0xff]  ;;  %v60_v15 = vld [vmem:[%s1495_s0 + $0x170] sm:$0xff] }
   0x6   :  { %133 = vmatpush.msra.mxu0 %v69_v9  ;;  %156 = vmatpush.msra.mxu1 %v70_v10  ;;  %v61_v16 = vld [vmem:[%s1495_s0 + $0x178] sm:$0xff]  ;;  %v47_v17 = vld [vmem:[%s1495_s0 + $0x108] sm:$0xff]  ;;  %v48_v18 = vld [vmem:[%s1495_s0 + $0x110] sm:$0xff] }
   0x7   :  { %179 = vmatpush.msra.mxu2 %v71_v11  ;;  %202 = vmatpush.msra.mxu3 %v72_v12  ;;  %v49_v19 = vld [vmem:[%s1495_s0 + $0x118] sm:$0xff]  ;;  %v50_v20 = vld [vmem:[%s1495_s0 + $0x120] sm:$0xff]  ;;  %v36_v21 = vld [vmem:[%s1495_s0 + $0xb0] sm:$0xff] }
   0x8   :  { %134 = vmatpush.msra.mxu0 %v58_v13  ;;  %157 = vmatpush.msra.mxu1 %v59_v14  ;;  %v37_v22 = vld [vmem:[%s1495_s0 + $0xb8] sm:$0xff]  ;;  %v38_v23 = vld [vmem:[%s1495_s0 + $0xc0] sm:$0xff]  ;;  %v39_v24 = vld [vmem:[%s1495_s0 + $0xc8] sm:$0xff] }
   0x9   :  { %180 = vmatpush.msra.mxu2 %v60_v15  ;;  %203 = vmatpush.msra.mxu3 %v61_v16  ;;  %v25_v25 = vld [vmem:[%s1495_s0 + $0x58] sm:$0xff]  ;;  %v26_v26 = vld [vmem:[%s1495_s0 + $0x60] sm:$0xff]  ;;  %v27_v27 = vld [vmem:[%s1495_s0 + $0x68] sm:$0xff] }
   0xa   :  { %135 = vmatpush.msra.mxu0 %v47_v17  ;;  %158 = vmatpush.msra.mxu1 %v48_v18  ;;  %v28_v28 = vld [vmem:[%s1495_s0 + $0x70] sm:$0xff]  ;;  %v14_v29 = vld [vmem:[%s1495_s0] sm:$0xff]  ;;  %v15_v30 = vld [vmem:[%s1495_s0 + $0x8] sm:$0xff] }
   0xb   :  { %181 = vmatpush.msra.mxu2 %v49_v19  ;;  %204 = vmatpush.msra.mxu3 %v50_v20  ;;  %v16_v31 = vld [vmem:[%s1495_s0 + $0x10] sm:$0xff]  ;;  %v17_v32 = vld [vmem:[%s1495_s0 + $0x18] sm:$0xff]  ;;  %v909_v33 = vld [vmem:[%s1496_s1] sm:$0xff] }
   0xc   :  { %136 = vmatpush.msra.mxu0 %v36_v21  ;;  %159 = vmatpush.msra.mxu1 %v37_v22  ;;  %v95_v34 = vld [vmem:[%s1495_s0 + $0x288] sm:$0xff]  ;;  %v96_v35 = vld [vmem:[%s1495_s0 + $0x290] sm:$0xff]  ;;  %v97_v36 = vld [vmem:[%s1495_s0 + $0x298] sm:$0xff] }
   0xd   :  { %182 = vmatpush.msra.mxu2 %v38_v23  ;;  %205 = vmatpush.msra.mxu3 %v39_v24  ;;  %v98_v37 = vld [vmem:[%s1495_s0 + $0x2a0] sm:$0xff]  ;;  %v84_v39 = vld [vmem:[%s1495_s0 + $0x230] sm:$0xff]  ;;  %v85_v40 = vld [vmem:[%s1495_s0 + $0x238] sm:$0xff] }
   0xe   :  { %137 = vmatpush.msra.mxu0 %v25_v25  ;;  %160 = vmatpush.msra.mxu1 %v26_v26  ;;  %v104_v38 = vld [vmem:[%s1497_s2] sm:$0xff]  ;;  %v87_v42 = vld [vmem:[%s1495_s0 + $0x248] sm:$0xff]  ;;  %v73_v43 = vld [vmem:[%s1495_s0 + $0x1d8] sm:$0xff] }
   0xf   :  { %183 = vmatpush.msra.mxu2 %v27_v27  ;;  %206 = vmatpush.msra.mxu3 %v28_v28  ;;  %v86_v41 = vld [vmem:[%s1495_s0 + $0x240] sm:$0xff]  ;;  %v75_v45 = vld [vmem:[%s1495_s0 + $0x1e8] sm:$0xff]  ;;  %v76_v46 = vld [vmem:[%s1495_s0 + $0x1f0] sm:$0xff] }
  0x10   :  { %138 = vmatpush.msra.mxu0 %v14_v29  ;;  %161 = vmatpush.msra.mxu1 %v15_v30  ;;  %v74_v44 = vld [vmem:[%s1495_s0 + $0x1e0] sm:$0xff]  ;;  %v63_v48 = vld [vmem:[%s1495_s0 + $0x188] sm:$0xff]  ;;  %v64_v49 = vld [vmem:[%s1495_s0 + $0x190] sm:$0xff] }
  0x11   :  { %184 = vmatpush.msra.mxu2 %v16_v31  ;;  %207 = vmatpush.msra.mxu3 %v17_v32  ;;  %v62_v47 = vld [vmem:[%s1495_s0 + $0x180] sm:$0xff]  ;;  %v65_v50 = vld [vmem:[%s1495_s0 + $0x198] sm:$0xff]  ;;  %v973_v51 = vld [vmem:[%s1496_s1 + $0x8] sm:$0xff] }
  0x12   :  { %705 = vmatmul.msk.f32.vlgmr.msra.gmra.mxu0 %vm116_vm0, %v909_v33  ;;  %707 = vmatmul.msk.f32.vlgmr.msra.gmra.mxu1 %vm116_vm0, %v909_v33  ;;  %v51_v52 = vld [vmem:[%s1495_s0 + $0x128] sm:$0xff]  ;;  %v52_v53 = vld [vmem:[%s1495_s0 + $0x130] sm:$0xff]  ;;  %v53_v54 = vld [vmem:[%s1495_s0 + $0x138] sm:$0xff] }
  0x13   :  { %709 = vmatmul.msk.f32.vlgmr.msra.gmra.mxu2 %vm116_vm0, %v909_v33  ;;  %711 = vmatmul.msk.f32.vlgmr.msra.gmra.mxu3 %vm116_vm0, %v909_v33  ;;  %v54_v55 = vld [vmem:[%s1495_s0 + $0x140] sm:$0xff]  ;;  %v105_v56 = vld [vmem:[%s1497_s2 + $0x8] sm:$0xff]  ;;  %v40_v57 = vld [vmem:[%s1495_s0 + $0xd0] sm:$0xff] }
  0x14   :  { %223 = vmatpush.msrb.mxu0 %v95_v34  ;;  %246 = vmatpush.msrb.mxu1 %v96_v35  ;;  %v41_v58 = vld [vmem:[%s1495_s0 + $0xd8] sm:$0xff]  ;;  %v42_v59 = vld [vmem:[%s1495_s0 + $0xe0] sm:$0xff]  ;;  %v43_v60 = vld [vmem:[%s1495_s0 + $0xe8] sm:$0xff] }
  0x15   :  { %269 = vmatpush.msrb.mxu2 %v97_v36  ;;  %292 = vmatpush.msrb.mxu3 %v98_v37  ;;  %v29_v61 = vld [vmem:[%s1495_s0 + $0x78] sm:$0xff]  ;;  %v30_v62 = vld [vmem:[%s1495_s0 + $0x80] sm:$0xff]  ;;  %v31_v63 = vld [vmem:[%s1495_s0 + $0x88] sm:$0xff] }
  0x16   :  { %108 = vperm.xlu0 %740, %v104_v38   ;;  %224 = vmatpush.msrb.mxu0 %v84_v39  ;;  %v32_v0 = vld [vmem:[%s1495_s0 + $0x90] sm:$0xff]  ;;  %v18_v1 = vld [vmem:[%s1495_s0 + $0x20] sm:$0xff]  ;;  %v19_v2 = vld [vmem:[%s1495_s0 + $0x28] sm:$0xff] }
  0x17   :  { %247 = vmatpush.msrb.mxu1 %v85_v40  ;;  %270 = vmatpush.msrb.mxu2 %v86_v41  ;;  %v20_v3 = vld [vmem:[%s1495_s0 + $0x30] sm:$0xff]  ;;  %v21_v4 = vld [vmem:[%s1495_s0 + $0x38] sm:$0xff]  ;;  %v99_v5 = vld [vmem:[%s1495_s0 + $0x2a8] sm:$0xff] }
  0x18   :  { %293 = vmatpush.msrb.mxu3 %v87_v42  ;;  %225 = vmatpush.msrb.mxu0 %v73_v43  ;;  %v100_v6 = vld [vmem:[%s1495_s0 + $0x2b0] sm:$0xff]  ;;  %v101_v7 = vld [vmem:[%s1495_s0 + $0x2b8] sm:$0xff]  ;;  %v90_v10 = vld [vmem:[%s1495_s0 + $0x260] sm:$0xff] }
  0x19   :  { %248 = vmatpush.msrb.mxu1 %v74_v44  ;;  %271 = vmatpush.msrb.mxu2 %v75_v45  ;;  %v88_v8 = vld [vmem:[%s1495_s0 + $0x250] sm:$0xff]  ;;  %v89_v9 = vld [vmem:[%s1495_s0 + $0x258] sm:$0xff]  ;;  %v78_v12 = vld [vmem:[%s1495_s0 + $0x200] sm:$0xff] }
  0x1a   :  { %294 = vmatpush.msrb.mxu3 %v76_v46  ;;  %226 = vmatpush.msrb.mxu0 %v62_v47  ;;  %v77_v11 = vld [vmem:[%s1495_s0 + $0x1f8] sm:$0xff]  ;;  %v79_v13 = vld [vmem:[%s1495_s0 + $0x208] sm:$0xff]  ;;  %v66_v14 = vld [vmem:[%s1495_s0 + $0x1a0] sm:$0xff] }
  0x1b   :  { %249 = vmatpush.msrb.mxu1 %v63_v48  ;;  %272 = vmatpush.msrb.mxu2 %v64_v49  ;;  %v67_v15 = vld [vmem:[%s1495_s0 + $0x1a8] sm:$0xff]  ;;  %v68_v16 = vld [vmem:[%s1495_s0 + $0x1b0] sm:$0xff]  ;;  %v57_v19 = vld [vmem:[%s1495_s0 + $0x158] sm:$0xff] }
  0x1c   :  { %295 = vmatpush.msrb.mxu3 %v65_v50  ;;  %706 = vmatmul.msk.f32.gmra.mxu0 %vm116_vm0, %v973_v51  ;;  %v55_v17 = vld [vmem:[%s1495_s0 + $0x148] sm:$0xff]  ;;  %v56_v18 = vld [vmem:[%s1495_s0 + $0x150] sm:$0xff]  ;;  %v45_v21 = vld [vmem:[%s1495_s0 + $0xf8] sm:$0xff] }
  0x1d   :  { %708 = vmatmul.msk.f32.gmra.mxu1 %vm116_vm0, %v973_v51  ;;  %710 = vmatmul.msk.f32.gmra.mxu2 %vm116_vm0, %v973_v51  ;;  %v44_v20 = vld [vmem:[%s1495_s0 + $0xf0] sm:$0xff]  ;;  %v46_v22 = vld [vmem:[%s1495_s0 + $0x100] sm:$0xff]  ;;  %v33_v23 = vld [vmem:[%s1495_s0 + $0x98] sm:$0xff] }
  0x1e   :  { %712 = vmatmul.msk.f32.gmra.mxu3 %vm116_vm0, %v973_v51  ;;  %227 = vmatpush.msrb.mxu0 %v51_v52  ;;  %v34_v24 = vld [vmem:[%s1495_s0 + $0xa0] sm:$0xff]  ;;  %v35_v25 = vld [vmem:[%s1495_s0 + $0xa8] sm:$0xff]  ;;  %v24_v28 = vld [vmem:[%s1495_s0 + $0x50] sm:$0xff] }
  0x1f   :  { %250 = vmatpush.msrb.mxu1 %v52_v53  ;;  %273 = vmatpush.msrb.mxu2 %v53_v54  ;;  %v22_v26 = vld [vmem:[%s1495_s0 + $0x40] sm:$0xff]  ;;  %v23_v27 = vld [vmem:[%s1495_s0 + $0x48] sm:$0xff]  ;;  %s786_s0 = smov 71  }
  0x20   :  { %296 = vmatpush.msrb.mxu3 %v54_v55  ;;  %113 = vperm.xlu0 %740, %v105_v56  }
  0x21   :  { %228 = vmatpush.msrb.mxu0 %v40_v57  ;;  %251 = vmatpush.msrb.mxu1 %v41_v58 }
  0x22   :  { %274 = vmatpush.msrb.mxu2 %v42_v59  ;;  %297 = vmatpush.msrb.mxu3 %v43_v60 }
  0x23   :  { %229 = vmatpush.msrb.mxu0 %v29_v61  ;;  %252 = vmatpush.msrb.mxu1 %v30_v62 }
  0x24   :  { %275 = vmatpush.msrb.mxu2 %v31_v63  ;;  %298 = vmatpush.msrb.mxu3 %v32_v0 }
  0x25   :  { %230 = vmatpush.msrb.mxu0 %v18_v1  ;;  %253 = vmatpush.msrb.mxu1 %v19_v2 }
  0x26   :  { %276 = vmatpush.msrb.mxu2 %v20_v3  ;;  %299 = vmatpush.msrb.mxu3 %v21_v4 }
  0x27   :  { %713 = vmatmul.msk.f32.vlgmr.msrb.gmra.mxu0 %vm116_vm0, %v909_v33  ;;  %715 = vmatmul.msk.f32.vlgmr.msrb.gmra.mxu1 %vm116_vm0, %v909_v33 }
  0x28   :  { %717 = vmatmul.msk.f32.vlgmr.msrb.gmra.mxu2 %vm116_vm0, %v909_v33  ;;  %719 = vmatmul.msk.f32.vlgmr.msrb.gmra.mxu3 %vm116_vm0, %v909_v33 }
  0x29   :  { %315 = vmatpush.msra.mxu0 %v99_v5  ;;  %727 = vmatpush.msra.mxu3 %v99_v5 }
  0x2a   :  { %338 = vmatpush.msra.mxu1 %v100_v6  ;;  %361 = vmatpush.msra.mxu2 %v101_v7 }
  0x2b   :  { %316 = vmatpush.msra.mxu0 %v88_v8  ;;  %728 = vmatpush.msra.mxu3 %v88_v8 }
  0x2c   :  { %339 = vmatpush.msra.mxu1 %v89_v9  ;;  %362 = vmatpush.msra.mxu2 %v90_v10 }
  0x2d   :  { %317 = vmatpush.msra.mxu0 %v77_v11  ;;  %729 = vmatpush.msra.mxu3 %v77_v11 }
  0x2e   :  { %340 = vmatpush.msra.mxu1 %v78_v12  ;;  %363 = vmatpush.msra.mxu2 %v79_v13 }
  0x2f   :  { %318 = vmatpush.msra.mxu0 %v66_v14  ;;  %730 = vmatpush.msra.mxu3 %v66_v14 }
  0x30   :  { %341 = vmatpush.msra.mxu1 %v67_v15  ;;  %364 = vmatpush.msra.mxu2 %v68_v16 }
  0x31   :  { %714 = vmatmul.msk.f32.gmra.mxu0 %vm116_vm0, %v973_v51  ;;  %716 = vmatmul.msk.f32.gmra.mxu1 %vm116_vm0, %v973_v51 }
  0x32   :  { %718 = vmatmul.msk.f32.gmra.mxu2 %vm116_vm0, %v973_v51  ;;  %720 = vmatmul.msk.f32.gmra.mxu3 %vm116_vm0, %v973_v51 }
  0x33   :  { %319 = vmatpush.msra.mxu0 %v55_v17  ;;  %731 = vmatpush.msra.mxu3 %v55_v17 }
  0x34   :  { %342 = vmatpush.msra.mxu1 %v56_v18  ;;  %365 = vmatpush.msra.mxu2 %v57_v19 }
  0x35   :  { %320 = vmatpush.msra.mxu0 %v44_v20  ;;  %732 = vmatpush.msra.mxu3 %v44_v20 }
  0x36   :  { %343 = vmatpush.msra.mxu1 %v45_v21  ;;  %366 = vmatpush.msra.mxu2 %v46_v22 }
  0x37   :  { %321 = vmatpush.msra.mxu0 %v33_v23  ;;  %733 = vmatpush.msra.mxu3 %v33_v23 }
  0x38   :  { %344 = vmatpush.msra.mxu1 %v34_v24  ;;  %367 = vmatpush.msra.mxu2 %v35_v25 }
  0x39   :  { %322 = vmatpush.msra.mxu0 %v22_v26  ;;  %734 = vmatpush.msra.mxu3 %v22_v26 }
  0x3a   :  { %345 = vmatpush.msra.mxu1 %v23_v27  ;;  %368 = vmatpush.msra.mxu2 %v24_v28 }
  0x3b   :  { %721 = vmatmul.msk.f32.vlgmr.msra.gmra.mxu0 %vm116_vm0, %v909_v33  ;;  %722 = vmatmul.msk.f32.vlgmr.msra.gmra.mxu3 %vm116_vm0, %v973_v51 }
  0x3c   :  { %723 = vmatmul.msk.f32.vlgmr.msra.gmra.mxu1 %vm116_vm0, %v909_v33  ;;  %725 = vmatmul.msk.f32.vlgmr.msra.gmra.mxu2 %vm116_vm0, %v909_v33 }
  0x44   :  { %724 = vmatmul.msk.f32.gmra.mxu1 %vm116_vm0, %v973_v51  ;;  %726 = vmatmul.msk.f32.gmra.mxu2 %vm116_vm0, %v973_v51 }
  0x88   :  { %v1134_v29 = vpop.permute.xlu0 %108 }
  0x8f   :  { %v140_v30 = vpop.f32.mrf.mxu0  ;;  %v163_v32 = vpop.f32.mrf.mxu1 }
  0x90   :  { %v141_v31 = vadd.f32 %v140_v30, %v1134_v29  ;;  %v164_v34 = vadd.f32 %v163_v32, %v1134_v29 }
  0x92   :  { %741 = vtanh.f32 %v141_v31  ;;  %v1145_v39 = vpop.permute.xlu0 %113 }
  0x96   :  { %v186_v35 = vpop.f32.mrf.mxu2  ;;  %v209_v33 = vpop.f32.mrf.mxu3 }
  0x97   :  { %v187_v36 = vadd.f32 %v186_v35, %v1134_v29  ;;  %v210_v40 = vadd.f32 %v209_v33, %v1134_v29 }
  0x98   :  { %v1139_v37 = vpop.eup %741 }
  0x99   :  { %743 = vtanh.f32 %v187_v36  ;;  %507 = vrot.lane.b32.xlu0 %v1139_v37, %s786_s0  ;;  %420 = vrot.lane.b32.xlu1 %v1139_v37, %s787_s28  ;;  %v143_v38 = vpop.f32.mrf.mxu0 }
  0x9a   :  { %745 = vtanh.f32 %v164_v34  ;;  %v144_v41 = vadd.f32 %v143_v38, %v1145_v39  ;;  %v166_v44 = vpop.f32.mrf.mxu1 }
  0x9b   :  { %747 = vtanh.f32 %v210_v40  ;;  %v167_v49 = vadd.f32 %v166_v44, %v1145_v39 }
  0x9c   :  { %749 = vtanh.f32 %v144_v41 }
  0x9f   :  { %v1149_v42 = vpop.eup %743 }
  0xa0   :  { %v1151_v43 = vpop.eup %745  ;;  %v189_v45 = vpop.f32.mrf.mxu2  ;;  %424 = vrot.lane.b32.xlu2 %v1149_v42, %s787_s28 }
  0xa1   :  { %v190_v46 = vadd.f32 %v189_v45, %v1145_v39  ;;  %422 = vrot.lane.b32.xlu1 %v1151_v43, %s787_s28  ;;  %v212_v47 = vpop.f32.mrf.mxu3  ;;  %v1159_v50 = vpop.eup %747 }
  0xa2   :  { %v1162_v52 = vpop.eup %749  ;;  %v213_v58 = vadd.f32 %v212_v47, %v1145_v39 }
  0xa3   :  { %751 = vtanh.f32 %v190_v46 }
  0xa4   :  { %v232_v48 = vpop.f32.mrf.mxu0  ;;  %753 = vtanh.f32 %v167_v49  ;;  %v255_v54 = vpop.f32.mrf.mxu1 }
  0xa5   :  { %v233_v51 = vadd.f32 %v232_v48, %v1134_v29  ;;  %v256_v2 = vadd.f32 %v255_v54, %v1134_v29 }
  0xa7   :  { %755 = vtanh.f32 %v233_v51 }
  0xa8   :  { %426 = vrot.lane.b32.xlu2 %v1159_v50, %s787_s28 }
  0xa9   :  { %v1166_v53 = vpop.eup %751  ;;  %442 = vrot.lane.b32.xlu1 %v1162_v52, %s787_s28 }
  0xaa   :  { %446 = vrot.lane.b32.xlu0 %v1166_v53, %s787_s28  ;;  %v1174_v59 = vpop.eup %753 }
  0xab   :  { %v278_v55 = vpop.f32.mrf.mxu2  ;;  %v301_v56 = vpop.f32.mrf.mxu3 }
  0xac   :  { %v279_v57 = vadd.f32 %v278_v55, %v1134_v29  ;;  %v302_v60 = vadd.f32 %v301_v56, %v1134_v29 }
  0xad   :  { %v1179_v61 = vpop.eup %755 }
  0xae   :  { %757 = vtanh.f32 %v279_v57  ;;  %v235_v62 = vpop.f32.mrf.mxu0  ;;  %v258_v63 = vpop.f32.mrf.mxu1 }
  0xaf   :  { %759 = vtanh.f32 %v213_v58  ;;  %v236_v0 = vadd.f32 %v235_v62, %v1145_v39  ;;  %v259_v4 = vadd.f32 %v258_v63, %v1145_v39 }
  0xb0   :  { %444 = vrot.lane.b32.xlu2 %v1174_v59, %s787_s28  ;;  %761 = vtanh.f32 %v302_v60 }
  0xb1   :  { %509 = vrot.lane.b32.xlu1 %v1162_v52, %s786_s0  ;;  %763 = vtanh.f32 %v236_v0 }
  0xb2   :  { %428 = vrot.lane.b32.xlu0 %v1179_v61, %s787_s28  ;;  %765 = vtanh.f32 %v256_v2 }
  0xb3   :  { %767 = vtanh.f32 %v259_v4 }
  0xb4   :  { %v1187_v3 = vpop.eup %757 }
  0xb5   :  { %v281_v1 = vpop.f32.mrf.mxu2  ;;  %v1190_v5 = vpop.eup %759 }
  0xb6   :  { %v1194_v6 = vpop.eup %761  ;;  %v304_v7 = vpop.f32.mrf.mxu3  ;;  %v282_v9 = vadd.f32 %v281_v1, %v1145_v39 }
  0xb7   :  { %v305_v8 = vadd.f32 %v304_v7, %v1145_v39  ;;  %v1202_v10 = vpop.eup %763 }
  0xb8   :  { %432 = vrot.lane.b32.xlu2 %v1187_v3, %s787_s28  ;;  %v1204_v12 = vpop.eup %765  ;;  %v324_v16 = vpop.f32.mrf.mxu0 }
  0xb9   :  { %448 = vrot.lane.b32.xlu1 %v1190_v5, %s787_s28  ;;  %v1209_v14 = vpop.eup %767  ;;  %769 = vtanh.f32 %v305_v8  ;;  %v347_v15 = vpop.f32.mrf.mxu1  ;;  %v325_v19 = vadd.f32 %v324_v16, %v1134_v29 }
  0xba   :  { %434 = vrot.lane.b32.xlu0 %v1194_v6, %s787_s28  ;;  %771 = vtanh.f32 %v282_v9  ;;  %v348_v18 = vadd.f32 %v347_v15, %v1134_v29 }
  0xbe   :  { %v327_v17 = vpop.f32.mrf.mxu3 }
  0xbf   :  { %v370_v11 = vpop.f32.mrf.mxu2  ;;  %v1217_v20 = vpop.eup %769  ;;  %v328_v21 = vadd.f32 %v327_v17, %v1145_v39 }
  0xc0   :  { %v371_v13 = vadd.f32 %v370_v11, %v1134_v29  ;;  %450 = vrot.lane.b32.xlu2 %v1202_v10, %s787_s28  ;;  %v1220_v22 = vpop.eup %771 }
  0xc1   :  { %430 = vrot.lane.b32.xlu1 %v1204_v12, %s787_s28  ;;  %v350_v25 = vpop.f32.mrf.mxu1 }
  0xc2   :  { %452 = vrot.lane.b32.xlu0 %v1209_v14, %s787_s28  ;;  %773 = vtanh.f32 %v371_v13  ;;  %v351_v27 = vadd.f32 %v350_v25, %v1145_v39 }
  0xc3   :  { %775 = vtanh.f32 %v348_v18 }
  0xc4   :  { %777 = vtanh.f32 %v325_v19 }
  0xc5   :  { %779 = vtanh.f32 %v328_v21 }
  0xc7   :  { %v373_v24 = vpop.f32.mrf.mxu2 }
  0xc8   :  { %456 = vrot.lane.b32.xlu2 %v1217_v20, %s787_s28  ;;  %v1224_v23 = vpop.eup %773  ;;  %v374_v26 = vadd.f32 %v373_v24, %v1145_v39 }
  0xc9   :  { %454 = vrot.lane.b32.xlu1 %v1220_v22, %s787_s28  ;;  %v1232_v28 = vpop.eup %775 }
  0xca   :  { %440 = vrot.lane.b32.xlu0 %v1224_v23, %s787_s28  ;;  %v1234_v29 = vpop.eup %777  ;;  %781 = vtanh.f32 %v374_v26 }
  0xcb   :  { %v1238_v30 = vpop.eup %779  ;;  %783 = vtanh.f32 %v351_v27 }
  0xd0   :  { %438 = vrot.lane.b32.xlu2 %v1232_v28, %s787_s28  ;;  %v1244_v31 = vpop.eup %781 }
  0xd1   :  { %436 = vrot.lane.b32.xlu1 %v1234_v29, %s787_s28  ;;  %v1246_v32 = vpop.eup %783 }
  0xd2   :  { %458 = vrot.lane.b32.xlu0 %v1238_v30, %s787_s28 }
  0xd8   :  { %462 = vrot.lane.b32.xlu2 %v1244_v31, %s787_s28 }
  0xd9   :  { %460 = vrot.lane.b32.xlu1 %v1246_v32, %s787_s28 }
  0xfa   :  { %v425_v34 = vpop.permute.xlu2 %424 }
 0x102   :  { %v427_v35 = vpop.permute.xlu2 %426 }
 0x103   :  { %v467_v36 = vsel %vm464_vm1, %v425_v34, %v427_v35 }
 0x104   :  { %v1254_v33 = vmax.f32 %v1149_v42, %v467_v36 }
 0x106   :  { %564 = vrot.lane.b32.xlu1 %v1254_v33, %s788_s29 }
 0x10a   :  { %v445_v40 = vpop.permute.xlu2 %444 }
 0x10b   :  { %v421_v38 = vpop.permute.xlu1 %420  ;;  %v1258_v41 = vpop.permute.xlu0 %507 }
 0x113   :  { %v423_v39 = vpop.permute.xlu1 %422 }
 0x114   :  { %v465_v44 = vsel %vm464_vm1, %v421_v38, %v423_v39  ;;  %v466_v45 = vsel %vm464_vm1, %v423_v39, %v425_v34 }
 0x115   :  { %v1263_v46 = vmax.f32 %v1139_v37, %v465_v44  ;;  %v1266_v47 = vmax.f32 %v1151_v43, %v466_v45  ;;  %v433_v37 = vpop.permute.xlu2 %432 }
 0x117   :  { %562 = vrot.lane.b32.xlu0 %v1266_v47, %s788_s29  ;;  %560 = vrot.lane.b32.xlu2 %v1263_v46, %s788_s29 }
 0x11b   :  { %v443_v42 = vpop.permute.xlu1 %442 }
 0x11c   :  { %v447_v48 = vpop.permute.xlu0 %446  ;;  %v475_v49 = vsel %vm464_vm1, %v443_v42, %v445_v40 }
 0x11d   :  { %v476_v51 = vsel %vm464_vm1, %v445_v40, %v447_v48  ;;  %v1275_v54 = vmax.f32 %v1162_v52, %v475_v49  ;;  %v451_v60 = vpop.permute.xlu2 %450 }
 0x11e   :  { %v1278_v55 = vmax.f32 %v1174_v59, %v476_v51 }
 0x11f   :  { %582 = vrot.lane.b32.xlu1 %v1275_v54, %s788_s29 }
 0x120   :  { %584 = vrot.lane.b32.xlu2 %v1278_v55, %s788_s29 }
 0x123   :  { %v510_v43 = vpop.permute.xlu1 %509 }
 0x124   :  { %v429_v56 = vpop.permute.xlu0 %428 }
 0x125   :  { %v468_v57 = vsel %vm464_vm1, %v427_v35, %v429_v56 }
 0x126   :  { %v1286_v58 = vmax.f32 %v1159_v50, %v468_v57  ;;  %v457_v50 = vpop.permute.xlu2 %456 }
 0x128   :  { %566 = vrot.lane.b32.xlu2 %v1286_v58, %s788_s29 }
 0x12b   :  { %v449_v52 = vpop.permute.xlu1 %448 }
 0x12c   :  { %v435_v59 = vpop.permute.xlu0 %434  ;;  %v477_v62 = vsel %vm464_vm1, %v447_v48, %v449_v52  ;;  %v478_v13 = vsel %vm464_vm1, %v449_v52, %v451_v60 }
 0x12d   :  { %v471_v63 = vsel %vm464_vm1, %v433_v37, %v435_v59  ;;  %v1293_v0 = vmax.f32 %v1166_v53, %v477_v62  ;;  %v1323_v17 = vmax.f32 %v1190_v5, %v478_v13 }
 0x12e   :  { %v1296_v1 = vmax.f32 %v1187_v3, %v471_v63 }
 0x12f   :  { %586 = vrot.lane.b32.xlu0 %v1293_v0, %s788_s29 }
 0x130   :  { %572 = vrot.lane.b32.xlu2 %v1296_v1, %s788_s29 }
 0x133   :  { %v431_v2 = vpop.permute.xlu1 %430 }
 0x134   :  { %v453_v4 = vpop.permute.xlu0 %452  ;;  %v469_v7 = vsel %vm464_vm1, %v429_v56, %v431_v2  ;;  %v470_v8 = vsel %vm464_vm1, %v431_v2, %v433_v37 }
 0x135   :  { %v479_v9 = vsel %vm464_vm1, %v451_v60, %v453_v4  ;;  %v1306_v53 = vmax.f32 %v1179_v61, %v469_v7  ;;  %v1309_v3 = vmax.f32 %v1204_v12, %v470_v8  ;;  %v439_v61 = vpop.permute.xlu2 %438 }
 0x136   :  { %v1312_v11 = vmax.f32 %v1202_v10, %v479_v9 }
 0x137   :  { %570 = vrot.lane.b32.xlu1 %v1309_v3, %s788_s29  ;;  %568 = vrot.lane.b32.xlu0 %v1306_v53, %s788_s29 }
 0x138   :  { %590 = vrot.lane.b32.xlu2 %v1312_v11, %s788_s29 }
 0x13b   :  { %v455_v15 = vpop.permute.xlu1 %454 }
 0x13c   :  { %v441_v16 = vpop.permute.xlu0 %440  ;;  %v480_v12 = vsel %vm464_vm1, %v453_v4, %v455_v15  ;;  %v481_v5 = vsel %vm464_vm1, %v455_v15, %v457_v50 }
 0x13d   :  { %v474_v10 = vsel %vm464_vm1, %v439_v61, %v441_v16  ;;  %v1327_v18 = vmax.f32 %v1209_v14, %v480_v12  ;;  %v1341_v14 = vmax.f32 %v1220_v22, %v481_v5  ;;  %v463_v34 = vpop.permute.xlu2 %462  ;;  %v514_v22 = vsel %vm513_vm2, %v441_v16, %v1258_v41 }
 0x13e   :  { %v1330_v19 = vmax.f32 %v1232_v28, %v474_v10  ;;  %v1359_v36 = vmax.f32 %v1224_v23, %v514_v22 }
 0x13f   :  { %588 = vrot.lane.b32.xlu1 %v1323_v17, %s788_s29  ;;  %592 = vrot.lane.b32.xlu0 %v1327_v18, %s788_s29 }
 0x140   :  { %578 = vrot.lane.b32.xlu2 %v1330_v19, %s788_s29 }
 0x143   :  { %v437_v21 = vpop.permute.xlu1 %436 }
 0x144   :  { %v459_v24 = vpop.permute.xlu0 %458  ;;  %v472_v25 = vsel %vm464_vm1, %v435_v59, %v437_v21  ;;  %v473_v35 = vsel %vm464_vm1, %v437_v21, %v439_v61 }
 0x145   :  { %v482_v26 = vsel %vm464_vm1, %v457_v50, %v459_v24  ;;  %v1345_v27 = vmax.f32 %v1194_v6, %v472_v25  ;;  %v515_v6 = vsel %vm513_vm2, %v463_v34, %v510_v43 }
 0x146   :  { %v1348_v28 = vmax.f32 %v1217_v20, %v482_v26  ;;  %v1362_v20 = vmax.f32 %v1234_v29, %v473_v35  ;;  %v1365_v38 = vmax.f32 %v1244_v31, %v515_v6 }
 0x147   :  { %594 = vrot.lane.b32.xlu1 %v1341_v14, %s788_s29  ;;  %574 = vrot.lane.b32.xlu0 %v1345_v27, %s788_s29 }
 0x148   :  { %596 = vrot.lane.b32.xlu2 %v1348_v28, %s788_s29 }
 0x14b   :  { %v461_v39 = vpop.permute.xlu1 %460 }
 0x14c   :  { %v483_v40 = vsel %vm464_vm1, %v459_v24, %v461_v39  ;;  %v484_v23 = vsel %vm464_vm1, %v461_v39, %v463_v34 }
 0x14d   :  { %v1376_v29 = vmax.f32 %v1238_v30, %v483_v40  ;;  %v1379_v31 = vmax.f32 %v1246_v32, %v484_v23 }
 0x14f   :  { %576 = vrot.lane.b32.xlu1 %v1362_v20, %s788_s29  ;;  %580 = vrot.lane.b32.xlu0 %v1359_v36, %s788_s29 }
 0x150   :  { %602 = vrot.lane.b32.xlu2 %v1365_v38, %s788_s29 }
 0x157   :  { %600 = vrot.lane.b32.xlu1 %v1379_v31, %s788_s29  ;;  %598 = vrot.lane.b32.xlu0 %v1376_v29, %s788_s29 }
 0x15f   :  { %649 = vrot.lane.b32.xlu1 %v1275_v54, %s789_s30  ;;  %647 = vrot.lane.b32.xlu0 %v1263_v46, %s789_s30 }
 0x171   :  { %v561_v41 = vpop.permute.xlu2 %560 }
 0x178   :  { %v565_v45 = vpop.permute.xlu1 %564 }
 0x17a   :  { %v585_v44 = vpop.permute.xlu2 %584 }
 0x182   :  { %v567_v30 = vpop.permute.xlu2 %566 }
 0x183   :  { %v607_v42 = vsel %vm604_vm3, %v565_v45, %v567_v30 }
 0x184   :  { %v658_v32 = vmax.f32 %v1254_v33, %v607_v42 }
 0x186   :  { %680 = vst [vmem:[%s1498_s3 + $0x10] sm:$0xff] %v658_v32 }
 0x189   :  { %v563_v48 = vpop.permute.xlu0 %562 }
 0x18a   :  { %v605_v49 = vsel %vm604_vm3, %v561_v41, %v563_v48  ;;  %v606_v51 = vsel %vm604_vm3, %v563_v48, %v565_v45 }
 0x18b   :  { %v656_v37 = vmax.f32 %v1263_v46, %v605_v49  ;;  %v657_v43 = vmax.f32 %v1266_v47, %v606_v51  ;;  %v573_v46 = vpop.permute.xlu2 %572 }
 0x18d   :  { %678 = vst [vmem:[%s1498_s3] sm:$0xff] %v656_v37 }
 0x18e   :  { %679 = vst [vmem:[%s1498_s3 + $0x8] sm:$0xff] %v657_v43 }
 0x191   :  { %v583_v33 = vpop.permute.xlu1 %582 }
 0x192   :  { %v615_v56 = vsel %vm604_vm3, %v583_v33, %v585_v44 }
 0x193   :  { %v667_v57 = vmax.f32 %v1275_v54, %v615_v56  ;;  %v591_v59 = vpop.permute.xlu2 %590 }
 0x195   :  { %690 = vst [vmem:[%s1498_s3 + $0x58] sm:$0xff] %v667_v57 }
 0x1a1   :  { %v587_v60 = vpop.permute.xlu0 %586 }
 0x1a2   :  { %v616_v47 = vsel %vm604_vm3, %v585_v44, %v587_v60 }
 0x1a3   :  { %v668_v52 = vmax.f32 %v1278_v55, %v616_v47  ;;  %v579_v55 = vpop.permute.xlu2 %578 }
 0x1a5   :  { %691 = vst [vmem:[%s1498_s3 + $0x60] sm:$0xff] %v668_v52 }
 0x1a9   :  { %v569_v62 = vpop.permute.xlu0 %568  ;;  %v571_v63 = vpop.permute.xlu1 %570 }
 0x1aa   :  { %v608_v50 = vsel %vm604_vm3, %v567_v30, %v569_v62  ;;  %v609_v54 = vsel %vm604_vm3, %v569_v62, %v571_v63  ;;  %v610_v2 = vsel %vm604_vm3, %v571_v63, %v573_v46 }
 0x1ab   :  { %v659_v4 = vmax.f32 %v1286_v58, %v608_v50  ;;  %v660_v7 = vmax.f32 %v1306_v53, %v609_v54  ;;  %v661_v8 = vmax.f32 %v1309_v3, %v610_v2  ;;  %v597_v12 = vpop.permute.xlu2 %596 }
 0x1ad   :  { %681 = vst [vmem:[%s1498_s3 + $0x18] sm:$0xff] %v659_v4 }
 0x1ae   :  { %682 = vst [vmem:[%s1498_s3 + $0x20] sm:$0xff] %v660_v7 }
 0x1af   :  { %683 = vst [vmem:[%s1498_s3 + $0x28] sm:$0xff] %v661_v8 }
 0x1b1   :  { %v593_v9 = vpop.permute.xlu0 %592  ;;  %v589_v13 = vpop.permute.xlu1 %588 }
 0x1b2   :  { %v619_v58 = vsel %vm604_vm3, %v591_v59, %v593_v9  ;;  %v617_v53 = vsel %vm604_vm3, %v587_v60, %v589_v13  ;;  %v618_v3 = vsel %vm604_vm3, %v589_v13, %v591_v59 }
 0x1b3   :  { %v671_v15 = vmax.f32 %v1312_v11, %v619_v58  ;;  %v669_v61 = vmax.f32 %v1293_v0, %v617_v53  ;;  %v670_v16 = vmax.f32 %v1323_v17, %v618_v3  ;;  %v603_v39 = vpop.permute.xlu2 %602 }
 0x1b5   :  { %694 = vst [vmem:[%s1498_s3 + $0x78] sm:$0xff] %v671_v15 }
 0x1b6   :  { %692 = vst [vmem:[%s1498_s3 + $0x68] sm:$0xff] %v669_v61 }
 0x1b7   :  { %693 = vst [vmem:[%s1498_s3 + $0x70] sm:$0xff] %v670_v16 }
 0x1b9   :  { %v575_v10 = vpop.permute.xlu0 %574  ;;  %v595_v5 = vpop.permute.xlu1 %594 }
 0x1ba   :  { %v611_v11 = vsel %vm604_vm3, %v573_v46, %v575_v10  ;;  %v620_v0 = vsel %vm604_vm3, %v593_v9, %v595_v5  ;;  %v621_v17 = vsel %vm604_vm3, %v595_v5, %v597_v12 }
 0x1bb   :  { %v662_v21 = vmax.f32 %v1296_v1, %v611_v11  ;;  %v672_v24 = vmax.f32 %v1327_v18, %v620_v0  ;;  %v673_v25 = vmax.f32 %v1341_v14, %v621_v17 }
 0x1bd   :  { %684 = vst [vmem:[%s1498_s3 + $0x30] sm:$0xff] %v662_v21 }
 0x1be   :  { %695 = vst [vmem:[%s1498_s3 + $0x80] sm:$0xff] %v672_v24 }
 0x1bf   :  { %696 = vst [vmem:[%s1498_s3 + $0x88] sm:$0xff] %v673_v25 }
 0x1c1   :  { %v581_v26 = vpop.permute.xlu0 %580  ;;  %v577_v34 = vpop.permute.xlu1 %576 }
 0x1c2   :  { %v614_v1 = vsel %vm604_vm3, %v579_v55, %v581_v26  ;;  %v612_v18 = vsel %vm604_vm3, %v575_v10, %v577_v34  ;;  %v613_v14 = vsel %vm604_vm3, %v577_v34, %v579_v55 }
 0x1c3   :  { %v665_v22 = vmax.f32 %v1330_v19, %v614_v1  ;;  %v663_v35 = vmax.f32 %v1345_v27, %v612_v18  ;;  %v664_v6 = vmax.f32 %v1362_v20, %v613_v14 }
 0x1c5   :  { %687 = vst [vmem:[%s1498_s3 + $0x48] sm:$0xff] %v665_v22 }
 0x1c6   :  { %685 = vst [vmem:[%s1498_s3 + $0x38] sm:$0xff] %v663_v35 }
 0x1c7   :  { %686 = vst [vmem:[%s1498_s3 + $0x40] sm:$0xff] %v664_v6 }
 0x1c9   :  { %v599_v40 = vpop.permute.xlu0 %598  ;;  %v601_v23 = vpop.permute.xlu1 %600 }
 0x1ca   :  { %v622_v19 = vsel %vm604_vm3, %v597_v12, %v599_v40  ;;  %v623_v27 = vsel %vm604_vm3, %v599_v40, %v601_v23  ;;  %v624_v20 = vsel %vm604_vm3, %v601_v23, %v603_v39 }
 0x1cb   :  { %v674_v41 = vmax.f32 %v1348_v28, %v622_v19  ;;  %v675_v44 = vmax.f32 %v1376_v29, %v623_v27  ;;  %v676_v45 = vmax.f32 %v1379_v31, %v624_v20 }
 0x1cd   :  { %697 = vst [vmem:[%s1498_s3 + $0x90] sm:$0xff] %v674_v41 }
 0x1ce   :  { %698 = vst [vmem:[%s1498_s3 + $0x98] sm:$0xff] %v675_v44 }
 0x1cf   :  { %699 = vst [vmem:[%s1498_s3 + $0xa0] sm:$0xff] %v676_v45 }
 0x1d1   :  { %v648_v30 = vpop.permute.xlu0 %647  ;;  %v650_v42 = vpop.permute.xlu1 %649 }
 0x1d2   :  { %v654_v28 = vsel %vm653_vm4, %v581_v26, %v648_v30  ;;  %v655_v29 = vsel %vm653_vm4, %v603_v39, %v650_v42 }
 0x1d3   :  { %v666_v31 = vmax.f32 %v1359_v36, %v654_v28  ;;  %v677_v32 = vmax.f32 %v1365_v38, %v655_v29 }
 0x1d5   :  { %689 = vst.msk [vmem:[%s1498_s3 + $0x50] sm:$0xff] %vm688_vm5, %v666_v31 }
 0x1d6   :  { %700 = vst.msk [vmem:[%s1498_s3 + $0xa8] sm:$0xff] %vm688_vm5, %v677_v32 }

// kernel: mnist_cnn_forward.4
= control target key start
LH: loop header
LB: loop body
LE: loop exit
PB: predicated region body
PF: predicated region fallthrough
CT: control target
= control target key end

     0   :  { %s396_s27 = smov 127   ;;  %vm258_vm0 = vcmask 1039360   ;;  %s397_s28 = smov 67   ;;  %vm283_vm1 = vcmask 580608   ;;  %vm345_vm2 = vcmask 547840   ;;  %vm320_vm3 = vcmask 1006592   ;;  %s715_s0 = inlined_call_operand.vmem [shape: f32[1,256,200], index: 0, kind: input, shape index: {}]   ;;  %s716_s1 = inlined_call_operand.vmem [shape: f32[32,256], index: 1, kind: input, shape index: {}]   ;;  %s717_s2 = inlined_call_operand.vmem [shape: f32[32,1], index: 2, kind: input, shape index: {}]   ;;  %s718_s3 = inlined_call_operand.vmem [shape: f32[1,32,200], index: 3, kind: output, shape index: {}]  }
   0x1   :  { %v44_v0 = vld [vmem:[%s715_s0 + $0xf0] sm:$0xff]  ;;  %v45_v1 = vld [vmem:[%s715_s0 + $0xf8] sm:$0xff]  ;;  %v42_v2 = vld [vmem:[%s715_s0 + $0xe0] sm:$0xff]  ;;  %s398_s29 = smov 123   ;;  %vm359_vm4 = vcmask 588800  }
   0x2   :  { %110 = vmatpush.msra.mxu0 %v44_v0  ;;  %168 = vmatpush.msra.mxu2 %v45_v1  ;;  %v76_v3 = vld [vmem:[%s715_s0 + $0x1f0] sm:$0xff]  ;;  %v43_v4 = vld [vmem:[%s715_s0 + $0xe8] sm:$0xff]  ;;  %v77_v5 = vld [vmem:[%s715_s0 + $0x1f8] sm:$0xff] }
   0x3   :  { %139 = vmatpush.msra.mxu1 %v76_v3  ;;  %197 = vmatpush.msra.mxu3 %v77_v5  ;;  %v40_v6 = vld [vmem:[%s715_s0 + $0xd0] sm:$0xff]  ;;  %v74_v7 = vld [vmem:[%s715_s0 + $0x1e0] sm:$0xff]  ;;  %v41_v8 = vld [vmem:[%s715_s0 + $0xd8] sm:$0xff] }
   0x4   :  { %111 = vmatpush.msra.mxu0 %v42_v2  ;;  %169 = vmatpush.msra.mxu2 %v43_v4  ;;  %v75_v9 = vld [vmem:[%s715_s0 + $0x1e8] sm:$0xff]  ;;  %v72_v10 = vld [vmem:[%s715_s0 + $0x1d0] sm:$0xff]  ;;  %v38_v11 = vld [vmem:[%s715_s0 + $0xc0] sm:$0xff]  ;;  %v394_v4 = vmov 0  }
   0x5   :  { %140 = vmatpush.msra.mxu1 %v74_v7  ;;  %198 = vmatpush.msra.mxu3 %v75_v9  ;;  %v39_v12 = vld [vmem:[%s715_s0 + $0xc8] sm:$0xff]  ;;  %v73_v13 = vld [vmem:[%s715_s0 + $0x1d8] sm:$0xff]  ;;  %v70_v14 = vld [vmem:[%s715_s0 + $0x1c0] sm:$0xff] }
   0x6   :  { %112 = vmatpush.msra.mxu0 %v40_v6  ;;  %170 = vmatpush.msra.mxu2 %v41_v8  ;;  %v71_v15 = vld [vmem:[%s715_s0 + $0x1c8] sm:$0xff]  ;;  %v36_v16 = vld [vmem:[%s715_s0 + $0xb0] sm:$0xff]  ;;  %v37_v17 = vld [vmem:[%s715_s0 + $0xb8] sm:$0xff] }
   0x7   :  { %141 = vmatpush.msra.mxu1 %v72_v10  ;;  %199 = vmatpush.msra.mxu3 %v73_v13  ;;  %v68_v18 = vld [vmem:[%s715_s0 + $0x1b0] sm:$0xff]  ;;  %v69_v19 = vld [vmem:[%s715_s0 + $0x1b8] sm:$0xff]  ;;  %v34_v20 = vld [vmem:[%s715_s0 + $0xa0] sm:$0xff] }
   0x8   :  { %113 = vmatpush.msra.mxu0 %v38_v11  ;;  %171 = vmatpush.msra.mxu2 %v39_v12  ;;  %v35_v21 = vld [vmem:[%s715_s0 + $0xa8] sm:$0xff]  ;;  %v66_v22 = vld [vmem:[%s715_s0 + $0x1a0] sm:$0xff]  ;;  %v32_v24 = vld [vmem:[%s715_s0 + $0x90] sm:$0xff] }
   0x9   :  { %142 = vmatpush.msra.mxu1 %v70_v14  ;;  %200 = vmatpush.msra.mxu3 %v71_v15  ;;  %v67_v23 = vld [vmem:[%s715_s0 + $0x1a8] sm:$0xff]  ;;  %v33_v25 = vld [vmem:[%s715_s0 + $0x98] sm:$0xff]  ;;  %v64_v26 = vld [vmem:[%s715_s0 + $0x190] sm:$0xff] }
   0xa   :  { %114 = vmatpush.msra.mxu0 %v36_v16  ;;  %172 = vmatpush.msra.mxu2 %v37_v17  ;;  %v65_v27 = vld [vmem:[%s715_s0 + $0x198] sm:$0xff]  ;;  %v30_v28 = vld [vmem:[%s715_s0 + $0x80] sm:$0xff]  ;;  %v31_v29 = vld [vmem:[%s715_s0 + $0x88] sm:$0xff] }
   0xb   :  { %143 = vmatpush.msra.mxu1 %v68_v18  ;;  %201 = vmatpush.msra.mxu3 %v69_v19  ;;  %v62_v30 = vld [vmem:[%s715_s0 + $0x180] sm:$0xff]  ;;  %v63_v31 = vld [vmem:[%s715_s0 + $0x188] sm:$0xff]  ;;  %v28_v32 = vld [vmem:[%s715_s0 + $0x70] sm:$0xff] }
   0xc   :  { %115 = vmatpush.msra.mxu0 %v34_v20  ;;  %173 = vmatpush.msra.mxu2 %v35_v21  ;;  %v29_v33 = vld [vmem:[%s715_s0 + $0x78] sm:$0xff]  ;;  %v60_v34 = vld [vmem:[%s715_s0 + $0x170] sm:$0xff]  ;;  %v26_v36 = vld [vmem:[%s715_s0 + $0x60] sm:$0xff] }
   0xd   :  { %144 = vmatpush.msra.mxu1 %v66_v22  ;;  %202 = vmatpush.msra.mxu3 %v67_v23  ;;  %v61_v35 = vld [vmem:[%s715_s0 + $0x178] sm:$0xff]  ;;  %v27_v37 = vld [vmem:[%s715_s0 + $0x68] sm:$0xff]  ;;  %v58_v38 = vld [vmem:[%s715_s0 + $0x160] sm:$0xff] }
   0xe   :  { %116 = vmatpush.msra.mxu0 %v32_v24  ;;  %174 = vmatpush.msra.mxu2 %v33_v25  ;;  %v59_v39 = vld [vmem:[%s715_s0 + $0x168] sm:$0xff]  ;;  %v24_v40 = vld [vmem:[%s715_s0 + $0x50] sm:$0xff]  ;;  %v25_v41 = vld [vmem:[%s715_s0 + $0x58] sm:$0xff] }
   0xf   :  { %145 = vmatpush.msra.mxu1 %v64_v26  ;;  %203 = vmatpush.msra.mxu3 %v65_v27  ;;  %v56_v42 = vld [vmem:[%s715_s0 + $0x150] sm:$0xff]  ;;  %v57_v43 = vld [vmem:[%s715_s0 + $0x158] sm:$0xff]  ;;  %v22_v44 = vld [vmem:[%s715_s0 + $0x40] sm:$0xff] }
  0x10   :  { %117 = vmatpush.msra.mxu0 %v30_v28  ;;  %175 = vmatpush.msra.mxu2 %v31_v29  ;;  %v23_v45 = vld [vmem:[%s715_s0 + $0x48] sm:$0xff]  ;;  %v54_v46 = vld [vmem:[%s715_s0 + $0x140] sm:$0xff]  ;;  %v20_v48 = vld [vmem:[%s715_s0 + $0x30] sm:$0xff] }
  0x11   :  { %146 = vmatpush.msra.mxu1 %v62_v30  ;;  %204 = vmatpush.msra.mxu3 %v63_v31  ;;  %v55_v47 = vld [vmem:[%s715_s0 + $0x148] sm:$0xff]  ;;  %v21_v49 = vld [vmem:[%s715_s0 + $0x38] sm:$0xff]  ;;  %v52_v50 = vld [vmem:[%s715_s0 + $0x130] sm:$0xff] }
  0x12   :  { %118 = vmatpush.msra.mxu0 %v28_v32  ;;  %176 = vmatpush.msra.mxu2 %v29_v33  ;;  %v53_v51 = vld [vmem:[%s715_s0 + $0x138] sm:$0xff]  ;;  %v18_v52 = vld [vmem:[%s715_s0 + $0x20] sm:$0xff]  ;;  %v19_v53 = vld [vmem:[%s715_s0 + $0x28] sm:$0xff] }
  0x13   :  { %147 = vmatpush.msra.mxu1 %v60_v34  ;;  %205 = vmatpush.msra.mxu3 %v61_v35  ;;  %v50_v54 = vld [vmem:[%s715_s0 + $0x120] sm:$0xff]  ;;  %v51_v55 = vld [vmem:[%s715_s0 + $0x128] sm:$0xff]  ;;  %v16_v56 = vld [vmem:[%s715_s0 + $0x10] sm:$0xff] }
  0x14   :  { %119 = vmatpush.msra.mxu0 %v26_v36  ;;  %177 = vmatpush.msra.mxu2 %v27_v37  ;;  %v17_v57 = vld [vmem:[%s715_s0 + $0x18] sm:$0xff]  ;;  %v48_v58 = vld [vmem:[%s715_s0 + $0x110] sm:$0xff]  ;;  %v14_v60 = vld [vmem:[%s715_s0] sm:$0xff] }
  0x15   :  { %148 = vmatpush.msra.mxu1 %v58_v38  ;;  %206 = vmatpush.msra.mxu3 %v59_v39  ;;  %v49_v59 = vld [vmem:[%s715_s0 + $0x118] sm:$0xff]  ;;  %v15_v61 = vld [vmem:[%s715_s0 + $0x8] sm:$0xff]  ;;  %v78_v62 = vld [vmem:[%s716_s1] sm:$0xff] }
  0x16   :  { %120 = vmatpush.msra.mxu0 %v24_v40  ;;  %178 = vmatpush.msra.mxu2 %v25_v41  ;;  %v46_v63 = vld [vmem:[%s715_s0 + $0x100] sm:$0xff]  ;;  %v47_v0 = vld [vmem:[%s715_s0 + $0x108] sm:$0xff]  ;;  %v88_v3 = vld [vmem:[%s717_s2 + $0x10] sm:$0xff] }
  0x17   :  { %149 = vmatpush.msra.mxu1 %v56_v42  ;;  %207 = vmatpush.msra.mxu3 %v57_v43  ;;  %v79_v1 = vld [vmem:[%s716_s1 + $0x8] sm:$0xff]  ;;  %v86_v2 = vld [vmem:[%s717_s2] sm:$0xff]  ;;  %v80_v5 = vld [vmem:[%s716_s1 + $0x10] sm:$0xff] }
  0x18   :  { %121 = vmatpush.msra.mxu0 %v22_v44  ;;  %179 = vmatpush.msra.mxu2 %v23_v45  ;;  %v81_v6 = vld [vmem:[%s716_s1 + $0x18] sm:$0xff]  ;;  %v87_v7 = vld [vmem:[%s717_s2 + $0x8] sm:$0xff]  ;;  %v82_v9 = vld [vmem:[%s716_s1 + $0x20] sm:$0xff] }
  0x19   :  { %150 = vmatpush.msra.mxu1 %v54_v46  ;;  %208 = vmatpush.msra.mxu3 %v55_v47  ;;  %v89_v8 = vld [vmem:[%s717_s2 + $0x18] sm:$0xff]  ;;  %v83_v10 = vld [vmem:[%s716_s1 + $0x28] sm:$0xff]  ;;  %v84_v11 = vld [vmem:[%s716_s1 + $0x30] sm:$0xff] }
  0x1a   :  { %122 = vmatpush.msra.mxu0 %v20_v48  ;;  %180 = vmatpush.msra.mxu2 %v21_v49  ;;  %v85_v12 = vld [vmem:[%s716_s1 + $0x38] sm:$0xff]  ;;  %s395_s1 = smov 71  }
  0x1b   :  { %151 = vmatpush.msra.mxu1 %v52_v50  ;;  %209 = vmatpush.msra.mxu3 %v53_v51 }
  0x1c   :  { %123 = vmatpush.msra.mxu0 %v18_v52  ;;  %181 = vmatpush.msra.mxu2 %v19_v53 }
  0x1d   :  { %152 = vmatpush.msra.mxu1 %v50_v54  ;;  %210 = vmatpush.msra.mxu3 %v51_v55 }
  0x1e   :  { %124 = vmatpush.msra.mxu0 %v16_v56  ;;  %182 = vmatpush.msra.mxu2 %v17_v57 }
  0x1f   :  { %153 = vmatpush.msra.mxu1 %v48_v58  ;;  %211 = vmatpush.msra.mxu3 %v49_v59 }
  0x20   :  { %125 = vmatpush.msra.mxu0 %v14_v60  ;;  %183 = vmatpush.msra.mxu2 %v15_v61 }
  0x21   :  { %126 = vmatmul.f32.vlgmr.msra.gmra.mxu0 %v78_v62  ;;  %184 = vmatmul.f32.vlgmr.msra.gmra.mxu2 %v78_v62 }
  0x22   :  { %154 = vmatpush.msra.mxu1 %v46_v63  ;;  %212 = vmatpush.msra.mxu3 %v47_v0 }
  0x23   :  { %155 = vmatmul.f32.vlgmr.msra.gmra.mxu1 %v79_v1  ;;  %213 = vmatmul.f32.vlgmr.msra.gmra.mxu3 %v79_v1 }
  0x24   :  { %376 = vset.pattern.permute.xlu0 %v394_v4  ;;  %377 = vset.pattern.permute.xlu1 %v394_v4 }
  0x25   :  { %92 = vperm.xlu0 %376, %v86_v2   ;;  %102 = vperm.xlu1 %377, %v88_v3  }
  0x29   :  { %129 = vmatmul.f32.gmra.mxu0 %v80_v5  ;;  %187 = vmatmul.f32.gmra.mxu2 %v80_v5 }
  0x2b   :  { %158 = vmatmul.f32.gmra.mxu1 %v81_v6  ;;  %216 = vmatmul.f32.gmra.mxu3 %v81_v6 }
  0x2d   :  { %97 = vperm.xlu0 %376, %v87_v7   ;;  %107 = vperm.xlu1 %377, %v89_v8  }
  0x31   :  { %132 = vmatmul.f32.gmra.mxu0 %v82_v9  ;;  %190 = vmatmul.f32.gmra.mxu2 %v82_v9 }
  0x33   :  { %161 = vmatmul.f32.gmra.mxu1 %v83_v10  ;;  %219 = vmatmul.f32.gmra.mxu3 %v83_v10 }
  0x39   :  { %135 = vmatmul.f32.gmra.mxu0 %v84_v11  ;;  %193 = vmatmul.f32.gmra.mxu2 %v84_v11 }
  0x3b   :  { %164 = vmatmul.f32.gmra.mxu1 %v85_v12  ;;  %222 = vmatmul.f32.gmra.mxu3 %v85_v12 }
  0x97   :  { %v93_v13 = vpop.permute.xlu0 %92  ;;  %v103_v28 = vpop.permute.xlu1 %102 }
  0x9e   :  { %v127_v14 = vpop.f32.mrf.mxu0 }
  0x9f   :  { %v128_v15 = vadd.f32 %v127_v14, %v93_v13  ;;  %v98_v19 = vpop.permute.xlu0 %97  ;;  %v108_v40 = vpop.permute.xlu1 %107 }
  0xa0   :  { %v156_v16 = vpop.f32.mrf.mxu1 }
  0xa1   :  { %v157_v17 = vadd.f32 %v156_v16, %v128_v15 }
  0xa3   :  { %378 = vtanh.f32 %v157_v17 }
  0xa4   :  { %v185_v18 = vpop.f32.mrf.mxu2 }
  0xa5   :  { %v186_v20 = vadd.f32 %v185_v18, %v93_v13 }
  0xa6   :  { %v130_v21 = vpop.f32.mrf.mxu0  ;;  %v214_v22 = vpop.f32.mrf.mxu3 }
  0xa7   :  { %v131_v23 = vadd.f32 %v130_v21, %v98_v19  ;;  %v215_v24 = vadd.f32 %v214_v22, %v186_v20 }
  0xa8   :  { %v159_v25 = vpop.f32.mrf.mxu1 }
  0xa9   :  { %v379_v26 = vpop.eup %378  ;;  %380 = vtanh.f32 %v215_v24  ;;  %v160_v27 = vadd.f32 %v159_v25, %v131_v23 }
  0xaa   :  { %271 = vrot.lane.b32.xlu0 %v379_v26, %s395_s1  ;;  %242 = vrot.lane.b32.xlu2 %v379_v26, %s396_s27 }
  0xab   :  { %382 = vtanh.f32 %v160_v27 }
  0xac   :  { %v188_v29 = vpop.f32.mrf.mxu2 }
  0xad   :  { %v189_v30 = vadd.f32 %v188_v29, %v98_v19 }
  0xae   :  { %v133_v31 = vpop.f32.mrf.mxu0  ;;  %v217_v32 = vpop.f32.mrf.mxu3 }
  0xaf   :  { %v381_v33 = vpop.eup %380  ;;  %v134_v34 = vadd.f32 %v133_v31, %v103_v28  ;;  %v218_v35 = vadd.f32 %v217_v32, %v189_v30 }
  0xb0   :  { %v162_v36 = vpop.f32.mrf.mxu1 }
  0xb1   :  { %v383_v37 = vpop.eup %382  ;;  %384 = vtanh.f32 %v218_v35  ;;  %v163_v38 = vadd.f32 %v162_v36, %v134_v34 }
  0xb2   :  { %246 = vrot.lane.b32.xlu0 %v383_v37, %s396_s27  ;;  %244 = vrot.lane.b32.xlu2 %v381_v33, %s396_s27 }
  0xb3   :  { %386 = vtanh.f32 %v163_v38 }
  0xb4   :  { %v191_v39 = vpop.f32.mrf.mxu2 }
  0xb5   :  { %v192_v41 = vadd.f32 %v191_v39, %v103_v28 }
  0xb6   :  { %v136_v42 = vpop.f32.mrf.mxu0  ;;  %v220_v43 = vpop.f32.mrf.mxu3 }
  0xb7   :  { %v385_v44 = vpop.eup %384  ;;  %v137_v45 = vadd.f32 %v136_v42, %v108_v40  ;;  %v221_v46 = vadd.f32 %v220_v43, %v192_v41 }
  0xb8   :  { %v165_v47 = vpop.f32.mrf.mxu1  ;;  %248 = vrot.lane.b32.xlu1 %v385_v44, %s396_s27 }
  0xb9   :  { %v387_v48 = vpop.eup %386  ;;  %388 = vtanh.f32 %v221_v46  ;;  %v166_v49 = vadd.f32 %v165_v47, %v137_v45 }
  0xba   :  { %250 = vrot.lane.b32.xlu2 %v387_v48, %s396_s27 }
  0xbb   :  { %390 = vtanh.f32 %v166_v49 }
  0xbc   :  { %v194_v50 = vpop.f32.mrf.mxu2 }
  0xbd   :  { %v195_v51 = vadd.f32 %v194_v50, %v108_v40 }
  0xbe   :  { %v223_v52 = vpop.f32.mrf.mxu3 }
  0xbf   :  { %v389_v53 = vpop.eup %388  ;;  %v224_v54 = vadd.f32 %v223_v52, %v195_v51 }
  0xc0   :  { %252 = vrot.lane.b32.xlu0 %v389_v53, %s396_s27 }
  0xc1   :  { %v391_v55 = vpop.eup %390  ;;  %392 = vtanh.f32 %v224_v54 }
  0xc2   :  { %254 = vrot.lane.b32.xlu1 %v391_v55, %s396_s27 }
  0xc7   :  { %v393_v56 = vpop.eup %392 }
  0xc8   :  { %277 = vrot.lane.b32.xlu0 %v391_v55, %s395_s1  ;;  %256 = vrot.lane.b32.xlu2 %v393_v56, %s396_s27 }
  0xca   :  { %273 = vrot.lane.b32.xlu1 %v383_v37, %s395_s1 }
  0xd0   :  { %275 = vrot.lane.b32.xlu2 %v387_v48, %s395_s1 }
 0x104   :  { %v243_v57 = vpop.permute.xlu2 %242 }
 0x10c   :  { %v245_v58 = vpop.permute.xlu2 %244 }
 0x10d   :  { %v259_v59 = vsel %vm258_vm0, %v243_v57, %v245_v58 }
 0x10e   :  { %v288_v60 = vmax.f32 %v379_v26, %v259_v59 }
 0x110   :  { %333 = vrot.lane.b32.xlu0 %v288_v60, %s397_s28  ;;  %304 = vrot.lane.b32.xlu1 %v288_v60, %s398_s29 }
 0x114   :  { %v251_v0 = vpop.permute.xlu2 %250 }
 0x11c   :  { %v272_v61 = vpop.permute.xlu0 %271 }
 0x11d   :  { %v284_v62 = vsel %vm283_vm1, %v245_v58, %v272_v61 }
 0x11e   :  { %v289_v63 = vmax.f32 %v381_v33, %v284_v62 }
 0x120   :  { %306 = vrot.lane.b32.xlu2 %v289_v63, %s398_s29 }
 0x122   :  { %v257_v1 = vpop.permute.xlu2 %256 }
 0x124   :  { %v247_v2 = vpop.permute.xlu0 %246 }
 0x12a   :  { %v249_v3 = vpop.permute.xlu1 %248  ;;  %v276_v6 = vpop.permute.xlu2 %275 }
 0x12b   :  { %v260_v4 = vsel %vm258_vm0, %v247_v2, %v249_v3 }
 0x12c   :  { %v290_v5 = vmax.f32 %v383_v37, %v260_v4 }
 0x12e   :  { %308 = vrot.lane.b32.xlu0 %v290_v5, %s398_s29 }
 0x132   :  { %v253_v7 = vpop.permute.xlu0 %252 }
 0x133   :  { %v261_v8 = vsel %vm258_vm0, %v251_v0, %v253_v7  ;;  %v286_v9 = vsel %vm283_vm1, %v253_v7, %v276_v6 }
 0x134   :  { %v292_v10 = vmax.f32 %v387_v48, %v261_v8  ;;  %v293_v11 = vmax.f32 %v389_v53, %v286_v9  ;;  %v255_v12 = vpop.permute.xlu1 %254 }
 0x135   :  { %v262_v13 = vsel %vm258_vm0, %v255_v12, %v257_v1 }
 0x136   :  { %312 = vrot.lane.b32.xlu2 %v292_v10, %s398_s29  ;;  %314 = vrot.lane.b32.xlu0 %v293_v11, %s398_s29  ;;  %v294_v16 = vmax.f32 %v391_v55, %v262_v13 }
 0x13a   :  { %v278_v14 = vpop.permute.xlu0 %277 }
 0x13b   :  { %v287_v15 = vsel %vm283_vm1, %v257_v1, %v278_v14 }
 0x13c   :  { %v295_v17 = vmax.f32 %v393_v56, %v287_v15  ;;  %v274_v18 = vpop.permute.xlu1 %273 }
 0x13d   :  { %v285_v19 = vsel %vm283_vm1, %v249_v3, %v274_v18 }
 0x13e   :  { %v291_v20 = vmax.f32 %v385_v44, %v285_v19  ;;  %318 = vrot.lane.b32.xlu2 %v295_v17, %s398_s29  ;;  %339 = vrot.lane.b32.xlu0 %v294_v16, %s397_s28 }
 0x140   :  { %310 = vrot.lane.b32.xlu1 %v291_v20, %s398_s29 }
 0x146   :  { %337 = vrot.lane.b32.xlu2 %v292_v10, %s397_s28 }
 0x148   :  { %316 = vrot.lane.b32.xlu1 %v294_v16, %s398_s29 }
 0x150   :  { %335 = vrot.lane.b32.xlu1 %v290_v5, %s397_s28 }
 0x17a   :  { %v307_v21 = vpop.permute.xlu2 %306 }
 0x182   :  { %v334_v22 = vpop.permute.xlu0 %333  ;;  %v305_v23 = vpop.permute.xlu1 %304 }
 0x183   :  { %v346_v24 = vsel %vm345_vm2, %v307_v21, %v334_v22  ;;  %v321_v25 = vsel %vm320_vm3, %v305_v23, %v307_v21 }
 0x184   :  { %v351_v26 = vmax.f32 %v289_v63, %v346_v24  ;;  %v350_v27 = vmax.f32 %v288_v60, %v321_v25 }
 0x186   :  { %360 = vst.msk [vmem:[%s718_s3 + $0x8] sm:$0xff] %vm359_vm4, %v351_v26 }
 0x187   :  { %358 = vst [vmem:[%s718_s3] sm:$0xff] %v350_v27 }
 0x190   :  { %v313_v28 = vpop.permute.xlu2 %312 }
 0x198   :  { %v319_v29 = vpop.permute.xlu2 %318 }
 0x1a0   :  { %v309_v30 = vpop.permute.xlu0 %308  ;;  %v338_v31 = vpop.permute.xlu2 %337 }
 0x1a8   :  { %v315_v32 = vpop.permute.xlu0 %314 }
 0x1a9   :  { %v323_v33 = vsel %vm320_vm3, %v313_v28, %v315_v32  ;;  %v348_v34 = vsel %vm345_vm2, %v315_v32, %v338_v31 }
 0x1aa   :  { %v354_v35 = vmax.f32 %v292_v10, %v323_v33  ;;  %v355_v36 = vmax.f32 %v293_v11, %v348_v34 }
 0x1ac   :  { %363 = vst [vmem:[%s718_s3 + $0x20] sm:$0xff] %v354_v35 }
 0x1ad   :  { %364 = vst.msk [vmem:[%s718_s3 + $0x28] sm:$0xff] %vm359_vm4, %v355_v36 }
 0x1b0   :  { %v340_v37 = vpop.permute.xlu0 %339 }
 0x1b1   :  { %v349_v38 = vsel %vm345_vm2, %v319_v29, %v340_v37 }
 0x1b2   :  { %v357_v39 = vmax.f32 %v295_v17, %v349_v38  ;;  %v311_v40 = vpop.permute.xlu1 %310 }
 0x1b3   :  { %v322_v41 = vsel %vm320_vm3, %v309_v30, %v311_v40 }
 0x1b4   :  { %366 = vst.msk [vmem:[%s718_s3 + $0x38] sm:$0xff] %vm359_vm4, %v357_v39  ;;  %v352_v42 = vmax.f32 %v290_v5, %v322_v41 }
 0x1b6   :  { %361 = vst [vmem:[%s718_s3 + $0x10] sm:$0xff] %v352_v42 }
 0x1ba   :  { %v317_v43 = vpop.permute.xlu1 %316 }
 0x1bb   :  { %v324_v44 = vsel %vm320_vm3, %v317_v43, %v319_v29 }
 0x1bc   :  { %v356_v45 = vmax.f32 %v294_v16, %v324_v44 }
 0x1be   :  { %365 = vst [vmem:[%s718_s3 + $0x30] sm:$0xff] %v356_v45 }
 0x1c2   :  { %v336_v46 = vpop.permute.xlu1 %335 }
 0x1c3   :  { %v347_v47 = vsel %vm345_vm2, %v311_v40, %v336_v46 }
 0x1c4   :  { %v353_v48 = vmax.f32 %v291_v20, %v347_v47 }
 0x1c6   :  { %362 = vst.msk [vmem:[%s718_s3 + $0x18] sm:$0xff] %vm359_vm4, %v353_v48 }

// kernel: mnist_cnn_forward.5
= control target key start
LH: loop header
LB: loop body
LE: loop exit
PB: predicated region body
PF: predicated region fallthrough
CT: control target
= control target key end

     0   :  { %vm258_vm0 = vcmask 261120   ;;  %vm288_vm1 = vcmask 64512   ;;  %vm290_vm2 = vcmask 58368   ;;  %s615_s0 = inlined_call_operand.vmem [shape: f32[512,8], index: 0, kind: input, shape index: {}]   ;;  %s616_s1 = inlined_call_operand.vmem [shape: f32[32,512], index: 1, kind: input, shape index: {}]   ;;  %s617_s2 = inlined_call_operand.vmem [shape: f32[32,1], index: 2, kind: input, shape index: {}]   ;;  %s618_s4 = inlined_call_operand.vmem [shape: f32[10,1], index: 4, kind: input, shape index: {}]   ;;  %s619_s3 = inlined_call_operand.vmem [shape: f32[10,32], index: 3, kind: input, shape index: {}]   ;;  %s620_s5 = inlined_call_operand.vmem [shape: f32[10,8], index: 5, kind: output, shape index: {}]  }
   0x1   :  { %v83_v0 = vld [vmem:[%s615_s0 + $0x178] sm:$0xff]  ;;  %v82_v2 = vld [vmem:[%s615_s0 + $0x170] sm:$0xff]  ;;  %v81_v6 = vld [vmem:[%s615_s0 + $0x168] sm:$0xff] }
   0x2   :  { %v51_v1 = vld [vmem:[%s615_s0 + $0x78] sm:$0xff]  ;;  %182 = vmatpush.msra.mxu2 %v83_v0  ;;  %v50_v4 = vld [vmem:[%s615_s0 + $0x70] sm:$0xff]  ;;  %v49_v8 = vld [vmem:[%s615_s0 + $0x68] sm:$0xff] }
   0x3   :  { %124 = vmatpush.msra.mxu0 %v51_v1  ;;  %v99_v3 = vld [vmem:[%s615_s0 + $0x1f8] sm:$0xff]  ;;  %v98_v7 = vld [vmem:[%s615_s0 + $0x1f0] sm:$0xff]  ;;  %v97_v10 = vld [vmem:[%s615_s0 + $0x1e8] sm:$0xff] }
   0x4   :  { %v67_v5 = vld [vmem:[%s615_s0 + $0xf8] sm:$0xff]  ;;  %211 = vmatpush.msra.mxu3 %v99_v3  ;;  %183 = vmatpush.msra.mxu2 %v82_v2  ;;  %v66_v9 = vld [vmem:[%s615_s0 + $0xf0] sm:$0xff]  ;;  %v80_v11 = vld [vmem:[%s615_s0 + $0x160] sm:$0xff] }
   0x5   :  { %153 = vmatpush.msra.mxu1 %v67_v5  ;;  %125 = vmatpush.msra.mxu0 %v50_v4  ;;  %v48_v12 = vld [vmem:[%s615_s0 + $0x60] sm:$0xff]  ;;  %v65_v13 = vld [vmem:[%s615_s0 + $0xe8] sm:$0xff]  ;;  %v79_v16 = vld [vmem:[%s615_s0 + $0x158] sm:$0xff]  ;;  %v314_v5 = vmov 0  }
   0x6   :  { %212 = vmatpush.msra.mxu3 %v98_v7  ;;  %184 = vmatpush.msra.mxu2 %v81_v6  ;;  %v96_v14 = vld [vmem:[%s615_s0 + $0x1e0] sm:$0xff]  ;;  %v47_v17 = vld [vmem:[%s615_s0 + $0x58] sm:$0xff]  ;;  %v78_v20 = vld [vmem:[%s615_s0 + $0x150] sm:$0xff] }
   0x7   :  { %154 = vmatpush.msra.mxu1 %v66_v9  ;;  %126 = vmatpush.msra.mxu0 %v49_v8  ;;  %v64_v15 = vld [vmem:[%s615_s0 + $0xe0] sm:$0xff]  ;;  %v95_v18 = vld [vmem:[%s615_s0 + $0x1d8] sm:$0xff]  ;;  %v46_v21 = vld [vmem:[%s615_s0 + $0x50] sm:$0xff] }
   0x8   :  { %213 = vmatpush.msra.mxu3 %v97_v10  ;;  %185 = vmatpush.msra.mxu2 %v80_v11  ;;  %v63_v19 = vld [vmem:[%s615_s0 + $0xd8] sm:$0xff]  ;;  %v94_v22 = vld [vmem:[%s615_s0 + $0x1d0] sm:$0xff]  ;;  %v77_v24 = vld [vmem:[%s615_s0 + $0x148] sm:$0xff] }
   0x9   :  { %155 = vmatpush.msra.mxu1 %v65_v13  ;;  %127 = vmatpush.msra.mxu0 %v48_v12  ;;  %v62_v23 = vld [vmem:[%s615_s0 + $0xd0] sm:$0xff]  ;;  %v45_v25 = vld [vmem:[%s615_s0 + $0x48] sm:$0xff]  ;;  %v76_v28 = vld [vmem:[%s615_s0 + $0x140] sm:$0xff] }
   0xa   :  { %214 = vmatpush.msra.mxu3 %v96_v14  ;;  %186 = vmatpush.msra.mxu2 %v79_v16  ;;  %v93_v26 = vld [vmem:[%s615_s0 + $0x1c8] sm:$0xff]  ;;  %v44_v29 = vld [vmem:[%s615_s0 + $0x40] sm:$0xff]  ;;  %v75_v32 = vld [vmem:[%s615_s0 + $0x138] sm:$0xff] }
   0xb   :  { %156 = vmatpush.msra.mxu1 %v64_v15  ;;  %128 = vmatpush.msra.mxu0 %v47_v17  ;;  %v61_v27 = vld [vmem:[%s615_s0 + $0xc8] sm:$0xff]  ;;  %v92_v30 = vld [vmem:[%s615_s0 + $0x1c0] sm:$0xff]  ;;  %v43_v33 = vld [vmem:[%s615_s0 + $0x38] sm:$0xff] }
   0xc   :  { %215 = vmatpush.msra.mxu3 %v95_v18  ;;  %187 = vmatpush.msra.mxu2 %v78_v20  ;;  %v60_v31 = vld [vmem:[%s615_s0 + $0xc0] sm:$0xff]  ;;  %v91_v34 = vld [vmem:[%s615_s0 + $0x1b8] sm:$0xff]  ;;  %v74_v36 = vld [vmem:[%s615_s0 + $0x130] sm:$0xff] }
   0xd   :  { %157 = vmatpush.msra.mxu1 %v63_v19  ;;  %129 = vmatpush.msra.mxu0 %v46_v21  ;;  %v59_v35 = vld [vmem:[%s615_s0 + $0xb8] sm:$0xff]  ;;  %v42_v37 = vld [vmem:[%s615_s0 + $0x30] sm:$0xff]  ;;  %v73_v40 = vld [vmem:[%s615_s0 + $0x128] sm:$0xff] }
   0xe   :  { %216 = vmatpush.msra.mxu3 %v94_v22  ;;  %188 = vmatpush.msra.mxu2 %v77_v24  ;;  %v90_v38 = vld [vmem:[%s615_s0 + $0x1b0] sm:$0xff]  ;;  %v41_v41 = vld [vmem:[%s615_s0 + $0x28] sm:$0xff]  ;;  %v72_v44 = vld [vmem:[%s615_s0 + $0x120] sm:$0xff] }
   0xf   :  { %158 = vmatpush.msra.mxu1 %v62_v23  ;;  %130 = vmatpush.msra.mxu0 %v45_v25  ;;  %v58_v39 = vld [vmem:[%s615_s0 + $0xb0] sm:$0xff]  ;;  %v89_v42 = vld [vmem:[%s615_s0 + $0x1a8] sm:$0xff]  ;;  %v40_v45 = vld [vmem:[%s615_s0 + $0x20] sm:$0xff] }
  0x10   :  { %217 = vmatpush.msra.mxu3 %v93_v26  ;;  %189 = vmatpush.msra.mxu2 %v76_v28  ;;  %v57_v43 = vld [vmem:[%s615_s0 + $0xa8] sm:$0xff]  ;;  %v88_v46 = vld [vmem:[%s615_s0 + $0x1a0] sm:$0xff]  ;;  %v71_v48 = vld [vmem:[%s615_s0 + $0x118] sm:$0xff] }
  0x11   :  { %159 = vmatpush.msra.mxu1 %v61_v27  ;;  %131 = vmatpush.msra.mxu0 %v44_v29  ;;  %v56_v47 = vld [vmem:[%s615_s0 + $0xa0] sm:$0xff]  ;;  %v39_v49 = vld [vmem:[%s615_s0 + $0x18] sm:$0xff]  ;;  %v70_v52 = vld [vmem:[%s615_s0 + $0x110] sm:$0xff] }
  0x12   :  { %218 = vmatpush.msra.mxu3 %v92_v30  ;;  %190 = vmatpush.msra.mxu2 %v75_v32  ;;  %v87_v50 = vld [vmem:[%s615_s0 + $0x198] sm:$0xff]  ;;  %v38_v53 = vld [vmem:[%s615_s0 + $0x10] sm:$0xff]  ;;  %v69_v56 = vld [vmem:[%s615_s0 + $0x108] sm:$0xff] }
  0x13   :  { %160 = vmatpush.msra.mxu1 %v60_v31  ;;  %132 = vmatpush.msra.mxu0 %v43_v33  ;;  %v55_v51 = vld [vmem:[%s615_s0 + $0x98] sm:$0xff]  ;;  %v86_v54 = vld [vmem:[%s615_s0 + $0x190] sm:$0xff]  ;;  %v37_v57 = vld [vmem:[%s615_s0 + $0x8] sm:$0xff] }
  0x14   :  { %219 = vmatpush.msra.mxu3 %v91_v34  ;;  %191 = vmatpush.msra.mxu2 %v74_v36  ;;  %v54_v55 = vld [vmem:[%s615_s0 + $0x90] sm:$0xff]  ;;  %v85_v58 = vld [vmem:[%s615_s0 + $0x188] sm:$0xff]  ;;  %v68_v60 = vld [vmem:[%s615_s0 + $0x100] sm:$0xff] }
  0x15   :  { %161 = vmatpush.msra.mxu1 %v59_v35  ;;  %133 = vmatpush.msra.mxu0 %v42_v37  ;;  %v53_v59 = vld [vmem:[%s615_s0 + $0x88] sm:$0xff]  ;;  %v36_v61 = vld [vmem:[%s615_s0] sm:$0xff]  ;;  %v22_v62 = vld [vmem:[%s616_s1 + $0x10] sm:$0xff] }
  0x16   :  { %220 = vmatpush.msra.mxu3 %v90_v38  ;;  %192 = vmatpush.msra.mxu2 %v73_v40  ;;  %v84_v63 = vld [vmem:[%s615_s0 + $0x180] sm:$0xff]  ;;  %v23_v1 = vld [vmem:[%s616_s1 + $0x18] sm:$0xff]  ;;  %v21_v3 = vld [vmem:[%s616_s1 + $0x8] sm:$0xff] }
  0x17   :  { %162 = vmatpush.msra.mxu1 %v58_v39  ;;  %134 = vmatpush.msra.mxu0 %v41_v41  ;;  %v20_v0 = vld [vmem:[%s616_s1] sm:$0xff]  ;;  %v101_v4 = vld [vmem:[%s617_s2 + $0x8] sm:$0xff]  ;;  %v103_v6 = vld [vmem:[%s617_s2 + $0x18] sm:$0xff] }
  0x18   :  { %221 = vmatpush.msra.mxu3 %v89_v42  ;;  %193 = vmatpush.msra.mxu2 %v72_v44  ;;  %v52_v2 = vld [vmem:[%s615_s0 + $0x80] sm:$0xff]  ;;  %v26_v7 = vld [vmem:[%s616_s1 + $0x30] sm:$0xff]  ;;  %v27_v9 = vld [vmem:[%s616_s1 + $0x38] sm:$0xff] }
  0x19   :  { %163 = vmatpush.msra.mxu1 %v57_v43  ;;  %135 = vmatpush.msra.mxu0 %v40_v45  ;;  %v24_v8 = vld [vmem:[%s616_s1 + $0x20] sm:$0xff]  ;;  %v25_v10 = vld [vmem:[%s616_s1 + $0x28] sm:$0xff]  ;;  %v102_v12 = vld [vmem:[%s617_s2 + $0x10] sm:$0xff] }
  0x1a   :  { %222 = vmatpush.msra.mxu3 %v88_v46  ;;  %194 = vmatpush.msra.mxu2 %v71_v48  ;;  %v100_v11 = vld [vmem:[%s617_s2] sm:$0xff]  ;;  %v30_v13 = vld [vmem:[%s616_s1 + $0x50] sm:$0xff]  ;;  %v31_v15 = vld [vmem:[%s616_s1 + $0x58] sm:$0xff] }
  0x1b   :  { %164 = vmatpush.msra.mxu1 %v56_v47  ;;  %136 = vmatpush.msra.mxu0 %v39_v49  ;;  %v28_v14 = vld [vmem:[%s616_s1 + $0x40] sm:$0xff]  ;;  %v29_v16 = vld [vmem:[%s616_s1 + $0x48] sm:$0xff]  ;;  %v34_v17 = vld [vmem:[%s616_s1 + $0x70] sm:$0xff] }
  0x1c   :  { %223 = vmatpush.msra.mxu3 %v87_v50  ;;  %195 = vmatpush.msra.mxu2 %v70_v52  ;;  %v32_v18 = vld [vmem:[%s616_s1 + $0x60] sm:$0xff]  ;;  %v35_v19 = vld [vmem:[%s616_s1 + $0x78] sm:$0xff]  ;;  %v33_v20 = vld [vmem:[%s616_s1 + $0x68] sm:$0xff] }
  0x1d   :  { %165 = vmatpush.msra.mxu1 %v55_v51  ;;  %137 = vmatpush.msra.mxu0 %v38_v53  ;;  %v246_v32 = vld [vmem:[%s618_s4] sm:$0xff]  ;;  %v247_v40 = vld [vmem:[%s618_s4 + $0x8] sm:$0x3] }
  0x1e   :  { %224 = vmatpush.msra.mxu3 %v86_v54  ;;  %196 = vmatpush.msra.mxu2 %v69_v56 }
  0x1f   :  { %166 = vmatpush.msra.mxu1 %v54_v55  ;;  %138 = vmatpush.msra.mxu0 %v37_v57 }
  0x20   :  { %225 = vmatpush.msra.mxu3 %v85_v58  ;;  %197 = vmatpush.msra.mxu2 %v68_v60 }
  0x21   :  { %167 = vmatpush.msra.mxu1 %v53_v59  ;;  %139 = vmatpush.msra.mxu0 %v36_v61 }
  0x22   :  { %198 = vmatmul.f32.vlgmr.msra.gmra.mxu2 %v22_v62  ;;  %226 = vmatpush.msra.mxu3 %v84_v63  ;;  %v244_v62 = vld [vmem:[%s619_s3] sm:$0xff]  ;;  %v245_v63 = vld [vmem:[%s619_s3 + $0x8] sm:$0x3] }
  0x23   :  { %140 = vmatmul.f32.vlgmr.msra.gmra.mxu0 %v20_v0  ;;  %227 = vmatmul.f32.vlgmr.msra.gmra.mxu3 %v23_v1 }
  0x24   :  { %168 = vmatpush.msra.mxu1 %v52_v2  ;;  %304 = vset.pattern.permute.xlu1 %v314_v5 }
  0x25   :  { %169 = vmatmul.f32.vlgmr.msra.gmra.mxu1 %v21_v3  ;;  %111 = vperm.xlu1 %304, %v101_v4  }
  0x26   :  { %303 = vset.pattern.permute.xlu0 %v314_v5  ;;  %305 = vset.pattern.permute.xlu2 %v314_v5 }
  0x27   :  { %121 = vperm.xlu0 %303, %v103_v6   ;;  %250 = vperm.xlu2 %305, %v246_v32  }
  0x2a   :  { %201 = vmatmul.f32.gmra.mxu2 %v26_v7 }
  0x2b   :  { %143 = vmatmul.f32.gmra.mxu0 %v24_v8  ;;  %230 = vmatmul.f32.gmra.mxu3 %v27_v9 }
  0x2d   :  { %172 = vmatmul.f32.gmra.mxu1 %v25_v10  ;;  %106 = vperm.xlu1 %304, %v100_v11  }
  0x2f   :  { %116 = vperm.xlu0 %303, %v102_v12   ;;  %255 = vperm.xlu2 %305, %v247_v40  }
  0x32   :  { %204 = vmatmul.f32.gmra.mxu2 %v30_v13 }
  0x33   :  { %146 = vmatmul.f32.gmra.mxu0 %v28_v14  ;;  %233 = vmatmul.f32.gmra.mxu3 %v31_v15 }
  0x35   :  { %175 = vmatmul.f32.gmra.mxu1 %v29_v16 }
  0x3a   :  { %207 = vmatmul.f32.gmra.mxu2 %v34_v17 }
  0x3b   :  { %149 = vmatmul.f32.gmra.mxu0 %v32_v18  ;;  %236 = vmatmul.f32.gmra.mxu3 %v35_v19 }
  0x3d   :  { %178 = vmatmul.f32.gmra.mxu1 %v33_v20 }
  0x81   :  { %v251_v1 = vpop.permute.xlu2 %250 }
  0x89   :  { %v256_v2 = vpop.permute.xlu2 %255 }
  0x97   :  { %v112_v28 = vpop.permute.xlu1 %111 }
  0x99   :  { %v122_v25 = vpop.permute.xlu0 %121 }
  0x9f   :  { %v107_v36 = vpop.permute.xlu1 %106 }
  0xa0   :  { %v141_v21 = vpop.f32.mrf.mxu0 }
  0xa1   :  { %v117_v33 = vpop.permute.xlu0 %116  ;;  %v142_v41 = vadd.f32 %v141_v21, %v107_v36 }
  0xa2   :  { %v170_v22 = vpop.f32.mrf.mxu1 }
  0xa3   :  { %v171_v47 = vadd.f32 %v170_v22, %v142_v41 }
  0xa5   :  { %v199_v23 = vpop.f32.mrf.mxu2 }
  0xa6   :  { %v228_v24 = vpop.f32.mrf.mxu3  ;;  %v200_v54 = vadd.f32 %v199_v23, %v171_v47 }
  0xa8   :  { %v144_v26 = vpop.f32.mrf.mxu0  ;;  %v229_v58 = vadd.f32 %v228_v24, %v200_v54 }
  0xa9   :  { %v145_v38 = vadd.f32 %v144_v26, %v112_v28 }
  0xaa   :  { %v173_v27 = vpop.f32.mrf.mxu1 }
  0xab   :  { %v174_v45 = vadd.f32 %v173_v27, %v145_v38 }
  0xad   :  { %v202_v29 = vpop.f32.mrf.mxu2 }
  0xae   :  { %v231_v30 = vpop.f32.mrf.mxu3  ;;  %v203_v51 = vadd.f32 %v202_v29, %v174_v45 }
  0xb0   :  { %v147_v31 = vpop.f32.mrf.mxu0  ;;  %v232_v57 = vadd.f32 %v231_v30, %v203_v51 }
  0xb1   :  { %v148_v35 = vadd.f32 %v147_v31, %v117_v33 }
  0xb2   :  { %v176_v34 = vpop.f32.mrf.mxu1 }
  0xb3   :  { %v177_v42 = vadd.f32 %v176_v34, %v148_v35 }
  0xb5   :  { %v205_v37 = vpop.f32.mrf.mxu2 }
  0xb6   :  { %v234_v39 = vpop.f32.mrf.mxu3  ;;  %v206_v48 = vadd.f32 %v205_v37, %v177_v42 }
  0xb8   :  { %v150_v43 = vpop.f32.mrf.mxu0  ;;  %v235_v55 = vadd.f32 %v234_v39, %v206_v48 }
  0xb9   :  { %v151_v44 = vadd.f32 %v150_v43, %v122_v25 }
  0xba   :  { %v179_v46 = vpop.f32.mrf.mxu1 }
  0xbb   :  { %v180_v49 = vadd.f32 %v179_v46, %v151_v44 }
  0xbd   :  { %v208_v50 = vpop.f32.mrf.mxu2 }
  0xbe   :  { %v209_v52 = vadd.f32 %v208_v50, %v180_v49  ;;  %v237_v53 = vpop.f32.mrf.mxu3 }
  0xc0   :  { %v238_v56 = vadd.f32 %v237_v53, %v209_v52 }
  0xc2   :  { %306 = vtanh.f32 %v238_v56 }
  0xc3   :  { %308 = vtanh.f32 %v235_v55 }
  0xc4   :  { %310 = vtanh.f32 %v232_v57 }
  0xc5   :  { %312 = vtanh.f32 %v229_v58 }
  0xc8   :  { %v307_v59 = vpop.eup %306 }
  0xc9   :  { %277 = vmatpush.msrb.mxu0 %v307_v59  ;;  %298 = vmatpush.msrb.mxu1 %v307_v59  ;;  %v309_v60 = vpop.eup %308 }
  0xca   :  { %v311_v61 = vpop.eup %310 }
  0xcb   :  { %278 = vmatpush.msrb.mxu0 %v309_v60  ;;  %299 = vmatpush.msrb.mxu1 %v309_v60  ;;  %v313_v0 = vpop.eup %312 }
  0xcd   :  { %279 = vmatpush.msrb.mxu0 %v311_v61  ;;  %300 = vmatpush.msrb.mxu1 %v311_v61 }
  0xcf   :  { %280 = vmatpush.msrb.mxu0 %v313_v0  ;;  %301 = vmatpush.msrb.mxu1 %v313_v0 }
  0xd0   :  { %296 = vmatmul.msk.f32.vlgmr.msrb.gmra.mxu0 %vm258_vm0, %v244_v62  ;;  %297 = vmatmul.msk.f32.vlgmr.msrb.gmra.mxu1 %vm258_vm0, %v245_v63 }
 0x14d   :  { %v282_v3 = vpop.f32.mrf.mxu0  ;;  %v285_v4 = vpop.f32.mrf.mxu1 }
 0x14e   :  { %v283_v5 = vadd.f32 %v282_v3, %v251_v1  ;;  %v286_v6 = vadd.f32 %v285_v4, %v256_v2 }
 0x150   :  { %289 = vst.msk [vmem:[%s620_s5] sm:$0xff] %vm288_vm1, %v283_v5 }
 0x151   :  { %291 = vst.msk [vmem:[%s620_s5 + $0x8] sm:$0x3] %vm290_vm2, %v286_v6 }

</bundles_post_ra>
